<compile_context>
chip_gen: v7x
topology: tpu7x:2x2x1
jax: 0.10.0
libtpu: 0.0.40
codegen_flags: <defaults>
</compile_context>

<pallas_src>
import functools
import math

import jax
import jax.numpy as jnp
from jax.experimental import pallas as pl
from jax.experimental.pallas import tpu as pltpu


# ---------------------------------------------------------------------------
# Kernel A: RMSNorm + QKV projection + RoPE  ->  head-major bf16 q/k/v
# ---------------------------------------------------------------------------
def qkv_rope_kernel(
    x_ref,        # (1, TQ, C)  f32
    attn_w_ref,   # (1, C)      f32
    w_qkv_ref,    # (C, 3C)     bf16  (q columns pre-scaled by 1/sqrt(D))
    cos_ref,      # (TQ, C)     f32   (per-head table tiled to full width)
    sin_ref,      # (TQ, C)     f32
    rot_ref,      # (C, C)      bf16  block-diagonal interleaved pair-swap
    q_ref,        # (1, H, TQ, D) bf16 out
    k_ref,        # (1, H, TQ, D) bf16 out
    v_ref,        # (1, H, TQ, D) bf16 out
    *,
    n_heads: int,
    eps: float,
):
    x = x_ref[0]                                   # (TQ, C) f32
    _, C = x.shape
    D = C // n_heads

    # RMSNorm (f32 statistics)
    ms = jnp.mean(x * x, axis=-1, keepdims=True)
    xn = x * jax.lax.rsqrt(ms + eps) * attn_w_ref[...]

    # QKV projection: bf16 MXU inputs, f32 accumulation
    qkv = jnp.dot(xn.astype(jnp.bfloat16), w_qkv_ref[...],
                  preferred_element_type=jnp.float32)          # (TQ, 3C)

    q = qkv[:, :C]
    k = qkv[:, C:2 * C]
    v = qkv[:, 2 * C:]

    # RoPE applied once to full-width q/k:
    #   out = x*cos + pair_swap(x)*sin, pair_swap done with one (C,C) matmul.
    cos = cos_ref[...]
    sin = sin_ref[...]
    rot = rot_ref[...]
    q_sw = jnp.dot(q.astype(jnp.bfloat16), rot, preferred_element_type=jnp.float32)
    k_sw = jnp.dot(k.astype(jnp.bfloat16), rot, preferred_element_type=jnp.float32)
    q_r = q * cos + q_sw * sin
    k_r = k * cos + k_sw * sin

    # Emit head-major layout directly (static lane slices -> per-head planes).
    for h in range(n_heads):
        sl = slice(h * D, (h + 1) * D)
        q_ref[0, h] = q_r[:, sl].astype(q_ref.dtype)
        k_ref[0, h] = k_r[:, sl].astype(k_ref.dtype)
        v_ref[0, h] = v[:, sl].astype(v_ref.dtype)


# ---------------------------------------------------------------------------
# Kernel B: head-batched attention + out-proj + residual + RMSNorm + MLP
# ---------------------------------------------------------------------------
def attn_mlp_kernel(
    x_ref,        # (1, TQ, C)    f32   residual input
    q_ref,        # (1, H, TQ, D) bf16
    k_ref,        # (1, H, T, D)  bf16
    v_ref,        # (1, H, T, D)  bf16
    ffn_w_ref,    # (1, C)        f32
    w_proj_ref,   # (C, C)        bf16
    w_fc1_ref,    # (C, 4C)       bf16
    w_fc2_ref,    # (4C, C)       bf16
    o_ref,        # (1, TQ, C)
    y_merge,      # VMEM scratch (TQ, C) f32
    *,
    n_heads: int,
    eps: float,
):
    q = q_ref[0]                                   # (H, TQ, D) bf16
    k = k_ref[0]                                   # (H, T,  D) bf16
    v = v_ref[0]                                   # (H, T,  D) bf16
    _, _, D = q.shape

    # Batched attention over heads (1/sqrt(D) already folded into q).
    scores = jnp.einsum('hqd,hkd->hqk', q, k,
                        preferred_element_type=jnp.float32)    # (H, TQ, T) f32
    m = jnp.max(scores, axis=-1, keepdims=True)
    p = jnp.exp(scores - m)
    denom = jnp.sum(p, axis=-1, keepdims=True)
    attn = p * pl.reciprocal(denom, approx=True)

    y3 = jnp.einsum('hqk,hkd->hqd', attn.astype(jnp.bfloat16), v,
                    preferred_element_type=jnp.float32)        # (H, TQ, D) f32

    # Merge heads back to (TQ, C) via static lane-slice stores into scratch.
    for h in range(n_heads):
        y_merge[:, h * D:(h + 1) * D] = y3[h]
    y = y_merge[...].astype(jnp.bfloat16)

    # Output projection + residual
    proj = jnp.dot(y, w_proj_ref[...], preferred_element_type=jnp.float32)
    x1 = x_ref[0] + proj

    # FFN branch
    ms2 = jnp.mean(x1 * x1, axis=-1, keepdims=True)
    xn2 = x1 * jax.lax.rsqrt(ms2 + eps) * ffn_w_ref[...]
    h1 = jnp.dot(xn2.astype(jnp.bfloat16), w_fc1_ref[...],
                 preferred_element_type=jnp.float32)           # (TQ, 4C)
    h1 = h1 * pl.reciprocal(1.0 + jnp.exp(-h1), approx=True)   # SiLU
    h2 = jnp.dot(h1.astype(jnp.bfloat16), w_fc2_ref[...],
                 preferred_element_type=jnp.float32)           # (TQ, C)

    o_ref[0] = (x1 + h2).astype(o_ref.dtype)


# ---------------------------------------------------------------------------
# RoPE helpers (plain JAX "glue")
# ---------------------------------------------------------------------------
def make_rope_tables(T, D, base=10000.0):
    half = D // 2
    freqs = 1.0 / (base ** (jnp.arange(half, dtype=jnp.float32) * 2.0 / D))
    angles = jnp.arange(T, dtype=jnp.float32)[:, None] * freqs[None, :]  # (T, D/2)
    cos = jnp.repeat(jnp.cos(angles), 2, axis=-1)    # cos[t, 2i] == cos[t, 2i+1]
    sin = jnp.repeat(jnp.sin(angles), 2, axis=-1)
    return cos, sin                                  # (T, D)


def make_rot_matrix(D):
    # x @ rot = (-x1, x0, -x3, x2, ...)  (torchtune interleaved pair swap)
    rot = jnp.zeros((D, D), jnp.float32)
    idx = jnp.arange(D // 2)
    rot = rot.at[2 * idx + 1, 2 * idx].set(-1.0)
    rot = rot.at[2 * idx, 2 * idx + 1].set(1.0)
    return rot


def _pick_time_tile(T):
    for cand in (256, 128, 64, 32, 16, 8):
        if cand <= T and T % cand == 0:
            return cand
    return T


# ---------------------------------------------------------------------------
# Wrapper
# ---------------------------------------------------------------------------
@functools.partial(jax.jit, static_argnames=("n_heads",))
def transformer_block(x, params, n_heads):
    B, T, C = x.shape
    assert C % n_heads == 0
    H = n_heads
    D = C // H
    eps = 1e-6

    TQ = _pick_time_tile(T)
    nT = T // TQ

    # RoPE tables tiled to full channel width; block-diag pair-swap matrix.
    cos_d, sin_d = make_rope_tables(T, D)
    cos = jnp.tile(cos_d, (1, H))                                  # (T, C)
    sin = jnp.tile(sin_d, (1, H))
    rot = jnp.kron(jnp.eye(H, dtype=jnp.float32),
                   make_rot_matrix(D)).astype(jnp.bfloat16)        # (C, C)

    attn_norm_w = params["att_norm_w"].reshape(1, C).astype(jnp.float32)
    ffn_norm_w = params["ffn_norm_w"].reshape(1, C).astype(jnp.float32)

    # nn.Linear weights are (out, in): transpose to (in, out); bf16 for MXU.
    # Fold 1/sqrt(D) into the q columns (RoPE is linear, so order is fine).
    w_qkv = params["c_attn_w"].T.astype(jnp.float32)               # (C, 3C)
    w_qkv = jnp.concatenate(
        [w_qkv[:, :C] * (1.0 / math.sqrt(D)), w_qkv[:, C:]], axis=-1
    ).astype(jnp.bfloat16)
    w_proj = params["c_proj_w"].T.astype(jnp.bfloat16)             # (C, C)
    w_fc1 = params["fc1_w"].T.astype(jnp.bfloat16)                 # (C, 4C)
    w_fc2 = params["fc2_w"].T.astype(jnp.bfloat16)                 # (4C, C)

    cparams = pltpu.CompilerParams(
        dimension_semantics=("parallel", "parallel"),
        vmem_limit_bytes=48 * 1024 * 1024,
    )

    # ------------------- kernel A: RMSNorm + QKV + RoPE -------------------
    ka = functools.partial(qkv_rope_kernel, n_heads=H, eps=eps)
    cost_a = pl.CostEstimate(
        flops=int(2 * B * T * C * 3 * C + 4 * B * T * C * C),
        transcendentals=0,
        bytes_accessed=int(4 * B * T * C + 8 * C * C + 8 * T * C
                           + 2 * 3 * B * T * C),
    )
    q_hm, k_hm, v_hm = pl.pallas_call(
        ka,
        out_shape=(
            jax.ShapeDtypeStruct((B, H, T, D), jnp.bfloat16),
            jax.ShapeDtypeStruct((B, H, T, D), jnp.bfloat16),
            jax.ShapeDtypeStruct((B, H, T, D), jnp.bfloat16),
        ),
        grid=(B, nT),
        in_specs=[
            pl.BlockSpec((1, TQ, C), lambda b, t: (b, t, 0)),     # x
            pl.BlockSpec((1, C), lambda b, t: (0, 0)),            # att_norm w
            pl.BlockSpec((C, 3 * C), lambda b, t: (0, 0)),        # w_qkv
            pl.BlockSpec((TQ, C), lambda b, t: (t, 0)),           # cos
            pl.BlockSpec((TQ, C), lambda b, t: (t, 0)),           # sin
            pl.BlockSpec((C, C), lambda b, t: (0, 0)),            # rot
        ],
        out_specs=(
            pl.BlockSpec((1, H, TQ, D), lambda b, t: (b, 0, t, 0)),
            pl.BlockSpec((1, H, TQ, D), lambda b, t: (b, 0, t, 0)),
            pl.BlockSpec((1, H, TQ, D), lambda b, t: (b, 0, t, 0)),
        ),
        compiler_params=cparams,
        cost_estimate=cost_a,
    )(x, attn_norm_w, w_qkv, cos, sin, rot)

    # ------------- kernel B: attention + proj + residual + MLP -------------
    kb = functools.partial(attn_mlp_kernel, n_heads=H, eps=eps)
    cost_b = pl.CostEstimate(
        flops=int(4 * B * H * T * T * D + 2 * B * T * C * C
                  + 16 * B * T * C * C),
        transcendentals=int(B * H * T * T + 4 * B * T * C),
        bytes_accessed=int(6 * B * T * C + 8 * B * T * C + 18 * C * C),
    )
    out = pl.pallas_call(
        kb,
        out_shape=jax.ShapeDtypeStruct((B, T, C), x.dtype),
        grid=(B, nT),
        in_specs=[
            pl.BlockSpec((1, TQ, C), lambda b, t: (b, t, 0)),         # x (residual)
            pl.BlockSpec((1, H, TQ, D), lambda b, t: (b, 0, t, 0)),   # q tile
            pl.BlockSpec((1, H, T, D), lambda b, t: (b, 0, 0, 0)),    # k full
            pl.BlockSpec((1, H, T, D), lambda b, t: (b, 0, 0, 0)),    # v full
            pl.BlockSpec((1, C), lambda b, t: (0, 0)),                # ffn_norm w
            pl.BlockSpec((C, C), lambda b, t: (0, 0)),                # w_proj
            pl.BlockSpec((C, 4 * C), lambda b, t: (0, 0)),            # w_fc1
            pl.BlockSpec((4 * C, C), lambda b, t: (0, 0)),            # w_fc2
        ],
        out_specs=pl.BlockSpec((1, TQ, C), lambda b, t: (b, t, 0)),
        scratch_shapes=[pltpu.VMEM((TQ, C), jnp.float32)],
        compiler_params=cparams,
        cost_estimate=cost_b,
    )(x, q_hm, k_hm, v_hm, ffn_norm_w, w_proj, w_fc1, w_fc2)

    return out


# ---------------------------------------------------------------------------
# Pure-JAX reference (mirrors the PyTorch forward, full f32)
# ---------------------------------------------------------------------------
def transformer_block_ref(x, params, n_heads):
    B, T, C = x.shape
    D = C // n_heads
    eps = 1e-6

    def rmsnorm(v, w):
        return v * jax.lax.rsqrt(jnp.mean(v * v, -1, keepdims=True) + eps) * w

    cos, sin = make_rope_tables(T, D)
    rot = make_rot_matrix(D)

    def rope(t):  # (B, H, T, D)
        return t * cos + jnp.einsum("bhtd,de->bhte", t, rot) * sin

    xn = rmsnorm(x, params["att_norm_w"])
    qkv = xn @ params["c_attn_w"].T                                  # (B, T, 3C)
    qkv = qkv.reshape(B, T, 3, n_heads, D).transpose(2, 0, 3, 1, 4)  # (3,B,H,T,D)
    q, k, v = qkv[0], qkv[1], qkv[2]
    q, k = rope(q), rope(k)
    scores = jnp.einsum("bhtd,bhsd->bhts", q, k) / math.sqrt(D)
    attn = jax.nn.softmax(scores, axis=-1)
    y = jnp.einsum("bhts,bhsd->bhtd", attn, v)
    y = y.transpose(0, 2, 1, 3).reshape(B, T, C)
    y = y @ params["c_proj_w"].T
    x = x + y

    xn2 = rmsnorm(x, params["ffn_norm_w"])
    h = xn2 @ params["fc1_w"].T
    h = h * jax.nn.sigmoid(h)
    x = x + h @ params["fc2_w"].T
    return x


# ---------------------------------------------------------------------------
# Main
# ---------------------------------------------------------------------------
if __name__ == "__main__":
    B, T, dim, n_heads = 2, 8, 32, 4

    key = jax.random.PRNGKey(0)
    k_x, k_attn, k_proj, k_fc1, k_fc2 = jax.random.split(key, 5)

    x = jax.random.normal(k_x, (B, T, dim), dtype=jnp.float32)

    params = {
        "att_norm_w": jnp.ones((dim,), jnp.float32),
        "ffn_norm_w": jnp.ones((dim,), jnp.float32),
        "c_attn_w": 0.05 * jax.random.normal(k_attn, (3 * dim, dim), jnp.float32),
        "c_proj_w": 0.05 * jax.random.normal(k_proj, (dim, dim), jnp.float32),
        "fc1_w": 0.05 * jax.random.normal(k_fc1, (4 * dim, dim), jnp.float32),
        "fc2_w": 0.05 * jax.random.normal(k_fc2, (dim, 4 * dim), jnp.float32),
    }

    out = transformer_block(x, params, n_heads)
    out = jax.block_until_ready(out)

    ref = transformer_block_ref(x, params, n_heads)
    assert out.shape == (B, T, dim)
    max_err = float(jnp.max(jnp.abs(out - ref)))
    # bf16 MXU operands + approx reciprocals -> compare with a bf16-level tolerance
    assert jnp.allclose(out, ref, rtol=2e-2, atol=2e-2), max_err

    print("KERNEL_OK")
</pallas_src>

<mosaic_0001>
module attributes {stable_mosaic.version = 11 : i64} {
  func.func @qkv_rope_kernel(%arg0: i32, %arg1: i32, %arg2: memref<1x8x32xf32, #tpu.memory_space<vmem>>, %arg3: memref<1x32xf32, #tpu.memory_space<vmem>>, %arg4: memref<32x96xbf16, #tpu.memory_space<vmem>>, %arg5: memref<8x32xf32, #tpu.memory_space<vmem>>, %arg6: memref<8x32xf32, #tpu.memory_space<vmem>>, %arg7: memref<32x32xbf16, #tpu.memory_space<vmem>>, %arg8: memref<1x4x8x8xbf16, #tpu.memory_space<vmem>>, %arg9: memref<1x4x8x8xbf16, #tpu.memory_space<vmem>>, %arg10: memref<1x4x8x8xbf16, #tpu.memory_space<vmem>>) attributes {dimension_semantics = [#tpu.dimension_semantics<parallel>, #tpu.dimension_semantics<parallel>], iteration_bounds = array<i64: 2, 1>, scalar_prefetch = 0 : i64, scratch_operands = 0 : i64, tpu.core_type = #tpu.core_type<tc>, window_params = [{transform_indices = @transform_0, window_bounds = array<i64: 1, 8, 32>}, {pipeline_mode = #tpu.pipeline_mode<synchronous>, transform_indices = @transform_1, window_bounds = array<i64: 1, 32>}, {pipeline_mode = #tpu.pipeline_mode<synchronous>, transform_indices = @transform_2, window_bounds = array<i64: 32, 96>}, {transform_indices = @transform_3, window_bounds = array<i64: 8, 32>}, {transform_indices = @transform_4, window_bounds = array<i64: 8, 32>}, {pipeline_mode = #tpu.pipeline_mode<synchronous>, transform_indices = @transform_5, window_bounds = array<i64: 32, 32>}, {transform_indices = @transform_6, window_bounds = array<i64: 1, 4, 8, 8>}, {transform_indices = @transform_7, window_bounds = array<i64: 1, 4, 8, 8>}, {transform_indices = @transform_8, window_bounds = array<i64: 1, 4, 8, 8>}]} {
    %c0 = arith.constant 0 : index
    %c0_0 = arith.constant 0 : index
    %c0_1 = arith.constant 0 : index
    %0 = vector.load %arg2[%c0, %c0_0, %c0_1] : memref<1x8x32xf32, #tpu.memory_space<vmem>>, vector<1x8x32xf32>
    %1 = vector.shape_cast %0 : vector<1x8x32xf32> to vector<8x32xf32>
    %2 = arith.mulf %1, %1 : vector<8x32xf32>
    %cst = arith.constant dense<0.000000e+00> : vector<8xf32>
    %3 = vector.multi_reduction <add>, %2, %cst [1] : vector<8x32xf32> to vector<8xf32>
    %4 = vector.shape_cast %3 : vector<8xf32> to vector<8x1xf32>
    %cst_2 = arith.constant 3.200000e+01 : f32
    %5 = vector.broadcast %cst_2 : f32 to vector<8x1xf32>
    %6 = arith.divf %4, %5 : vector<8x1xf32>
    %cst_3 = arith.constant 9.99999997E-7 : f32
    %7 = vector.broadcast %cst_3 : f32 to vector<8x1xf32>
    %8 = arith.addf %6, %7 : vector<8x1xf32>
    %9 = math.rsqrt %8 : vector<8x1xf32>
    %10 = vector.broadcast %9 : vector<8x1xf32> to vector<8x32xf32>
    %11 = arith.mulf %1, %10 : vector<8x32xf32>
    %c0_4 = arith.constant 0 : index
    %c0_5 = arith.constant 0 : index
    %12 = vector.load %arg3[%c0_4, %c0_5] : memref<1x32xf32, #tpu.memory_space<vmem>>, vector<1x32xf32>
    %13 = vector.broadcast %12 : vector<1x32xf32> to vector<8x32xf32>
    %14 = arith.mulf %11, %13 : vector<8x32xf32>
    %15 = arith.truncf %14 : vector<8x32xf32> to vector<8x32xbf16>
    %c0_6 = arith.constant 0 : index
    %c0_7 = arith.constant 0 : index
    %16 = vector.load %arg4[%c0_6, %c0_7] : memref<32x96xbf16, #tpu.memory_space<vmem>>, vector<32x96xbf16>
    %cst_8 = arith.constant dense<0.000000e+00> : vector<8x96xf32>
    %17 = tpu.matmul %15, %16, %cst_8 {dimension_numbers = #tpu.dot_dimension_numbers<[1], [0], [0], [1], [0, 0, 1, 1], [], []>} : vector<8x32xbf16>, vector<32x96xbf16>, vector<8x96xf32> -> vector<8x96xf32>
    %18 = vector.extract_strided_slice %17 {offsets = [0, 0], sizes = [8, 32], strides = [1, 1]} : vector<8x96xf32> to vector<8x32xf32>
    %19 = vector.extract_strided_slice %17 {offsets = [0, 32], sizes = [8, 32], strides = [1, 1]} : vector<8x96xf32> to vector<8x32xf32>
    %20 = vector.extract_strided_slice %17 {offsets = [0, 64], sizes = [8, 32], strides = [1, 1]} : vector<8x96xf32> to vector<8x32xf32>
    %c0_9 = arith.constant 0 : index
    %c0_10 = arith.constant 0 : index
    %21 = vector.load %arg5[%c0_9, %c0_10] : memref<8x32xf32, #tpu.memory_space<vmem>>, vector<8x32xf32>
    %c0_11 = arith.constant 0 : index
    %c0_12 = arith.constant 0 : index
    %22 = vector.load %arg6[%c0_11, %c0_12] : memref<8x32xf32, #tpu.memory_space<vmem>>, vector<8x32xf32>
    %c0_13 = arith.constant 0 : index
    %c0_14 = arith.constant 0 : index
    %23 = vector.load %arg7[%c0_13, %c0_14] : memref<32x32xbf16, #tpu.memory_space<vmem>>, vector<32x32xbf16>
    %24 = arith.truncf %18 : vector<8x32xf32> to vector<8x32xbf16>
    %cst_15 = arith.constant dense<0.000000e+00> : vector<8x32xf32>
    %25 = tpu.matmul %24, %23, %cst_15 {dimension_numbers = #tpu.dot_dimension_numbers<[1], [0], [0], [1], [0, 0, 1, 1], [], []>} : vector<8x32xbf16>, vector<32x32xbf16>, vector<8x32xf32> -> vector<8x32xf32>
    %26 = arith.truncf %19 : vector<8x32xf32> to vector<8x32xbf16>
    %cst_16 = arith.constant dense<0.000000e+00> : vector<8x32xf32>
    %27 = tpu.matmul %26, %23, %cst_16 {dimension_numbers = #tpu.dot_dimension_numbers<[1], [0], [0], [1], [0, 0, 1, 1], [], []>} : vector<8x32xbf16>, vector<32x32xbf16>, vector<8x32xf32> -> vector<8x32xf32>
    %28 = arith.mulf %18, %21 : vector<8x32xf32>
    %29 = arith.mulf %25, %22 : vector<8x32xf32>
    %30 = arith.addf %28, %29 : vector<8x32xf32>
    %31 = arith.mulf %19, %21 : vector<8x32xf32>
    %32 = arith.mulf %27, %22 : vector<8x32xf32>
    %33 = arith.addf %31, %32 : vector<8x32xf32>
    %34 = vector.extract_strided_slice %30 {offsets = [0, 0], sizes = [8, 8], strides = [1, 1]} : vector<8x32xf32> to vector<8x8xf32>
    %35 = arith.truncf %34 : vector<8x8xf32> to vector<8x8xbf16>
    %c0_17 = arith.constant 0 : index
    %c0_18 = arith.constant 0 : index
    %c0_19 = arith.constant 0 : index
    %c0_20 = arith.constant 0 : index
    %36 = vector.load %arg8[%c0_17, %c0_18, %c0_19, %c0_20] : memref<1x4x8x8xbf16, #tpu.memory_space<vmem>>, vector<1x1x8x8xbf16>
    %37 = vector.shape_cast %36 : vector<1x1x8x8xbf16> to vector<8x8xbf16>
    %38 = vector.shape_cast %35 : vector<8x8xbf16> to vector<1x1x8x8xbf16>
    tpu.vector_store %arg8[%c0_17, %c0_18, %c0_19, %c0_20], %38 {strides = array<i32>} : memref<1x4x8x8xbf16, #tpu.memory_space<vmem>>, vector<1x1x8x8xbf16>,
    %39 = vector.extract_strided_slice %33 {offsets = [0, 0], sizes = [8, 8], strides = [1, 1]} : vector<8x32xf32> to vector<8x8xf32>
    %40 = arith.truncf %39 : vector<8x8xf32> to vector<8x8xbf16>
    %c0_21 = arith.constant 0 : index
    %c0_22 = arith.constant 0 : index
    %c0_23 = arith.constant 0 : index
    %c0_24 = arith.constant 0 : index
    %41 = vector.load %arg9[%c0_21, %c0_22, %c0_23, %c0_24] : memref<1x4x8x8xbf16, #tpu.memory_space<vmem>>, vector<1x1x8x8xbf16>
    %42 = vector.shape_cast %41 : vector<1x1x8x8xbf16> to vector<8x8xbf16>
    %43 = vector.shape_cast %40 : vector<8x8xbf16> to vector<1x1x8x8xbf16>
    tpu.vector_store %arg9[%c0_21, %c0_22, %c0_23, %c0_24], %43 {strides = array<i32>} : memref<1x4x8x8xbf16, #tpu.memory_space<vmem>>, vector<1x1x8x8xbf16>,
    %44 = vector.extract_strided_slice %20 {offsets = [0, 0], sizes = [8, 8], strides = [1, 1]} : vector<8x32xf32> to vector<8x8xf32>
    %45 = arith.truncf %44 : vector<8x8xf32> to vector<8x8xbf16>
    %c0_25 = arith.constant 0 : index
    %c0_26 = arith.constant 0 : index
    %c0_27 = arith.constant 0 : index
    %c0_28 = arith.constant 0 : index
    %46 = vector.load %arg10[%c0_25, %c0_26, %c0_27, %c0_28] : memref<1x4x8x8xbf16, #tpu.memory_space<vmem>>, vector<1x1x8x8xbf16>
    %47 = vector.shape_cast %46 : vector<1x1x8x8xbf16> to vector<8x8xbf16>
    %48 = vector.shape_cast %45 : vector<8x8xbf16> to vector<1x1x8x8xbf16>
    tpu.vector_store %arg10[%c0_25, %c0_26, %c0_27, %c0_28], %48 {strides = array<i32>} : memref<1x4x8x8xbf16, #tpu.memory_space<vmem>>, vector<1x1x8x8xbf16>,
    %49 = vector.extract_strided_slice %30 {offsets = [0, 8], sizes = [8, 8], strides = [1, 1]} : vector<8x32xf32> to vector<8x8xf32>
    %50 = arith.truncf %49 : vector<8x8xf32> to vector<8x8xbf16>
    %c0_29 = arith.constant 0 : index
    %c1 = arith.constant 1 : index
    %c0_30 = arith.constant 0 : index
    %c0_31 = arith.constant 0 : index
    %51 = vector.load %arg8[%c0_29, %c1, %c0_30, %c0_31] : memref<1x4x8x8xbf16, #tpu.memory_space<vmem>>, vector<1x1x8x8xbf16>
    %52 = vector.shape_cast %51 : vector<1x1x8x8xbf16> to vector<8x8xbf16>
    %53 = vector.shape_cast %50 : vector<8x8xbf16> to vector<1x1x8x8xbf16>
    tpu.vector_store %arg8[%c0_29, %c1, %c0_30, %c0_31], %53 {strides = array<i32>} : memref<1x4x8x8xbf16, #tpu.memory_space<vmem>>, vector<1x1x8x8xbf16>,
    %54 = vector.extract_strided_slice %33 {offsets = [0, 8], sizes = [8, 8], strides = [1, 1]} : vector<8x32xf32> to vector<8x8xf32>
    %55 = arith.truncf %54 : vector<8x8xf32> to vector<8x8xbf16>
    %c0_32 = arith.constant 0 : index
    %c1_33 = arith.constant 1 : index
    %c0_34 = arith.constant 0 : index
    %c0_35 = arith.constant 0 : index
    %56 = vector.load %arg9[%c0_32, %c1_33, %c0_34, %c0_35] : memref<1x4x8x8xbf16, #tpu.memory_space<vmem>>, vector<1x1x8x8xbf16>
    %57 = vector.shape_cast %56 : vector<1x1x8x8xbf16> to vector<8x8xbf16>
    %58 = vector.shape_cast %55 : vector<8x8xbf16> to vector<1x1x8x8xbf16>
    tpu.vector_store %arg9[%c0_32, %c1_33, %c0_34, %c0_35], %58 {strides = array<i32>} : memref<1x4x8x8xbf16, #tpu.memory_space<vmem>>, vector<1x1x8x8xbf16>,
    %59 = vector.extract_strided_slice %20 {offsets = [0, 8], sizes = [8, 8], strides = [1, 1]} : vector<8x32xf32> to vector<8x8xf32>
    %60 = arith.truncf %59 : vector<8x8xf32> to vector<8x8xbf16>
    %c0_36 = arith.constant 0 : index
    %c1_37 = arith.constant 1 : index
    %c0_38 = arith.constant 0 : index
    %c0_39 = arith.constant 0 : index
    %61 = vector.load %arg10[%c0_36, %c1_37, %c0_38, %c0_39] : memref<1x4x8x8xbf16, #tpu.memory_space<vmem>>, vector<1x1x8x8xbf16>
    %62 = vector.shape_cast %61 : vector<1x1x8x8xbf16> to vector<8x8xbf16>
    %63 = vector.shape_cast %60 : vector<8x8xbf16> to vector<1x1x8x8xbf16>
    tpu.vector_store %arg10[%c0_36, %c1_37, %c0_38, %c0_39], %63 {strides = array<i32>} : memref<1x4x8x8xbf16, #tpu.memory_space<vmem>>, vector<1x1x8x8xbf16>,
    %64 = vector.extract_strided_slice %30 {offsets = [0, 16], sizes = [8, 8], strides = [1, 1]} : vector<8x32xf32> to vector<8x8xf32>
    %65 = arith.truncf %64 : vector<8x8xf32> to vector<8x8xbf16>
    %c0_40 = arith.constant 0 : index
    %c2 = arith.constant 2 : index
    %c0_41 = arith.constant 0 : index
    %c0_42 = arith.constant 0 : index
    %66 = vector.load %arg8[%c0_40, %c2, %c0_41, %c0_42] : memref<1x4x8x8xbf16, #tpu.memory_space<vmem>>, vector<1x1x8x8xbf16>
    %67 = vector.shape_cast %66 : vector<1x1x8x8xbf16> to vector<8x8xbf16>
    %68 = vector.shape_cast %65 : vector<8x8xbf16> to vector<1x1x8x8xbf16>
    tpu.vector_store %arg8[%c0_40, %c2, %c0_41, %c0_42], %68 {strides = array<i32>} : memref<1x4x8x8xbf16, #tpu.memory_space<vmem>>, vector<1x1x8x8xbf16>,
    %69 = vector.extract_strided_slice %33 {offsets = [0, 16], sizes = [8, 8], strides = [1, 1]} : vector<8x32xf32> to vector<8x8xf32>
    %70 = arith.truncf %69 : vector<8x8xf32> to vector<8x8xbf16>
    %c0_43 = arith.constant 0 : index
    %c2_44 = arith.constant 2 : index
    %c0_45 = arith.constant 0 : index
    %c0_46 = arith.constant 0 : index
    %71 = vector.load %arg9[%c0_43, %c2_44, %c0_45, %c0_46] : memref<1x4x8x8xbf16, #tpu.memory_space<vmem>>, vector<1x1x8x8xbf16>
    %72 = vector.shape_cast %71 : vector<1x1x8x8xbf16> to vector<8x8xbf16>
    %73 = vector.shape_cast %70 : vector<8x8xbf16> to vector<1x1x8x8xbf16>
    tpu.vector_store %arg9[%c0_43, %c2_44, %c0_45, %c0_46], %73 {strides = array<i32>} : memref<1x4x8x8xbf16, #tpu.memory_space<vmem>>, vector<1x1x8x8xbf16>,
    %74 = vector.extract_strided_slice %20 {offsets = [0, 16], sizes = [8, 8], strides = [1, 1]} : vector<8x32xf32> to vector<8x8xf32>
    %75 = arith.truncf %74 : vector<8x8xf32> to vector<8x8xbf16>
    %c0_47 = arith.constant 0 : index
    %c2_48 = arith.constant 2 : index
    %c0_49 = arith.constant 0 : index
    %c0_50 = arith.constant 0 : index
    %76 = vector.load %arg10[%c0_47, %c2_48, %c0_49, %c0_50] : memref<1x4x8x8xbf16, #tpu.memory_space<vmem>>, vector<1x1x8x8xbf16>
    %77 = vector.shape_cast %76 : vector<1x1x8x8xbf16> to vector<8x8xbf16>
    %78 = vector.shape_cast %75 : vector<8x8xbf16> to vector<1x1x8x8xbf16>
    tpu.vector_store %arg10[%c0_47, %c2_48, %c0_49, %c0_50], %78 {strides = array<i32>} : memref<1x4x8x8xbf16, #tpu.memory_space<vmem>>, vector<1x1x8x8xbf16>,
    %79 = vector.extract_strided_slice %30 {offsets = [0, 24], sizes = [8, 8], strides = [1, 1]} : vector<8x32xf32> to vector<8x8xf32>
    %80 = arith.truncf %79 : vector<8x8xf32> to vector<8x8xbf16>
    %c0_51 = arith.constant 0 : index
    %c3 = arith.constant 3 : index
    %c0_52 = arith.constant 0 : index
    %c0_53 = arith.constant 0 : index
    %81 = vector.load %arg8[%c0_51, %c3, %c0_52, %c0_53] : memref<1x4x8x8xbf16, #tpu.memory_space<vmem>>, vector<1x1x8x8xbf16>
    %82 = vector.shape_cast %81 : vector<1x1x8x8xbf16> to vector<8x8xbf16>
    %83 = vector.shape_cast %80 : vector<8x8xbf16> to vector<1x1x8x8xbf16>
    tpu.vector_store %arg8[%c0_51, %c3, %c0_52, %c0_53], %83 {strides = array<i32>} : memref<1x4x8x8xbf16, #tpu.memory_space<vmem>>, vector<1x1x8x8xbf16>,
    %84 = vector.extract_strided_slice %33 {offsets = [0, 24], sizes = [8, 8], strides = [1, 1]} : vector<8x32xf32> to vector<8x8xf32>
    %85 = arith.truncf %84 : vector<8x8xf32> to vector<8x8xbf16>
    %c0_54 = arith.constant 0 : index
    %c3_55 = arith.constant 3 : index
    %c0_56 = arith.constant 0 : index
    %c0_57 = arith.constant 0 : index
    %86 = vector.load %arg9[%c0_54, %c3_55, %c0_56, %c0_57] : memref<1x4x8x8xbf16, #tpu.memory_space<vmem>>, vector<1x1x8x8xbf16>
    %87 = vector.shape_cast %86 : vector<1x1x8x8xbf16> to vector<8x8xbf16>
    %88 = vector.shape_cast %85 : vector<8x8xbf16> to vector<1x1x8x8xbf16>
    tpu.vector_store %arg9[%c0_54, %c3_55, %c0_56, %c0_57], %88 {strides = array<i32>} : memref<1x4x8x8xbf16, #tpu.memory_space<vmem>>, vector<1x1x8x8xbf16>,
    %89 = vector.extract_strided_slice %20 {offsets = [0, 24], sizes = [8, 8], strides = [1, 1]} : vector<8x32xf32> to vector<8x8xf32>
    %90 = arith.truncf %89 : vector<8x8xf32> to vector<8x8xbf16>
    %c0_58 = arith.constant 0 : index
    %c3_59 = arith.constant 3 : index
    %c0_60 = arith.constant 0 : index
    %c0_61 = arith.constant 0 : index
    %91 = vector.load %arg10[%c0_58, %c3_59, %c0_60, %c0_61] : memref<1x4x8x8xbf16, #tpu.memory_space<vmem>>, vector<1x1x8x8xbf16>
    %92 = vector.shape_cast %91 : vector<1x1x8x8xbf16> to vector<8x8xbf16>
    %93 = vector.shape_cast %90 : vector<8x8xbf16> to vector<1x1x8x8xbf16>
    tpu.vector_store %arg10[%c0_58, %c3_59, %c0_60, %c0_61], %93 {strides = array<i32>} : memref<1x4x8x8xbf16, #tpu.memory_space<vmem>>, vector<1x1x8x8xbf16>,
    return
  }
  func.func @transform_0(%arg0: i32, %arg1: i32) -> (i32, i32, i32) {
    %c0_i32 = arith.constant 0 : i32
    %c0_i32_0 = arith.constant 0 : i32
    return %arg0, %arg1, %c0_i32 : i32, i32, i32
  }
  func.func @transform_1(%arg0: i32, %arg1: i32) -> (i32, i32) {
    %c0_i32 = arith.constant 0 : i32
    %c0_i32_0 = arith.constant 0 : i32
    %c0_i32_1 = arith.constant 0 : i32
    return %c0_i32, %c0_i32_0 : i32, i32
  }
  func.func @transform_2(%arg0: i32, %arg1: i32) -> (i32, i32) {
    %c0_i32 = arith.constant 0 : i32
    %c0_i32_0 = arith.constant 0 : i32
    %c0_i32_1 = arith.constant 0 : i32
    return %c0_i32, %c0_i32_0 : i32, i32
  }
  func.func @transform_3(%arg0: i32, %arg1: i32) -> (i32, i32) {
    %c0_i32 = arith.constant 0 : i32
    %c0_i32_0 = arith.constant 0 : i32
    return %arg1, %c0_i32 : i32, i32
  }
  func.func @transform_4(%arg0: i32, %arg1: i32) -> (i32, i32) {
    %c0_i32 = arith.constant 0 : i32
    %c0_i32_0 = arith.constant 0 : i32
    return %arg1, %c0_i32 : i32, i32
  }
  func.func @transform_5(%arg0: i32, %arg1: i32) -> (i32, i32) {
    %c0_i32 = arith.constant 0 : i32
    %c0_i32_0 = arith.constant 0 : i32
    %c0_i32_1 = arith.constant 0 : i32
    return %c0_i32, %c0_i32_0 : i32, i32
  }
  func.func @transform_6(%arg0: i32, %arg1: i32) -> (i32, i32, i32, i32) {
    %c0_i32 = arith.constant 0 : i32
    %c0_i32_0 = arith.constant 0 : i32
    %c0_i32_1 = arith.constant 0 : i32
    return %arg0, %c0_i32, %arg1, %c0_i32_0 : i32, i32, i32, i32
  }
  func.func @transform_7(%arg0: i32, %arg1: i32) -> (i32, i32, i32, i32) {
    %c0_i32 = arith.constant 0 : i32
    %c0_i32_0 = arith.constant 0 : i32
    %c0_i32_1 = arith.constant 0 : i32
    return %arg0, %c0_i32, %arg1, %c0_i32_0 : i32, i32, i32, i32
  }
  func.func @transform_8(%arg0: i32, %arg1: i32) -> (i32, i32, i32, i32) {
    %c0_i32 = arith.constant 0 : i32
    %c0_i32_0 = arith.constant 0 : i32
    %c0_i32_1 = arith.constant 0 : i32
    return %arg0, %c0_i32, %arg1, %c0_i32_0 : i32, i32, i32, i32
  }
}

module attributes {stable_mosaic.version = 11 : i64} {
  func.func @attn_mlp_kernel(%arg0: i32, %arg1: i32, %arg2: memref<1x8x32xf32, #tpu.memory_space<vmem>>, %arg3: memref<1x4x8x8xbf16, #tpu.memory_space<vmem>>, %arg4: memref<1x4x8x8xbf16, #tpu.memory_space<vmem>>, %arg5: memref<1x4x8x8xbf16, #tpu.memory_space<vmem>>, %arg6: memref<1x32xf32, #tpu.memory_space<vmem>>, %arg7: memref<32x32xbf16, #tpu.memory_space<vmem>>, %arg8: memref<32x128xbf16, #tpu.memory_space<vmem>>, %arg9: memref<128x32xbf16, #tpu.memory_space<vmem>>, %arg10: memref<1x8x32xf32, #tpu.memory_space<vmem>>, %arg11: memref<8x32xf32, #tpu.memory_space<vmem>>) attributes {dimension_semantics = [#tpu.dimension_semantics<parallel>, #tpu.dimension_semantics<parallel>], iteration_bounds = array<i64: 2, 1>, scalar_prefetch = 0 : i64, scratch_operands = 1 : i64, tpu.core_type = #tpu.core_type<tc>, window_params = [{transform_indices = @transform_0, window_bounds = array<i64: 1, 8, 32>}, {transform_indices = @transform_1, window_bounds = array<i64: 1, 4, 8, 8>}, {transform_indices = @transform_2, window_bounds = array<i64: 1, 4, 8, 8>}, {transform_indices = @transform_3, window_bounds = array<i64: 1, 4, 8, 8>}, {pipeline_mode = #tpu.pipeline_mode<synchronous>, transform_indices = @transform_4, window_bounds = array<i64: 1, 32>}, {pipeline_mode = #tpu.pipeline_mode<synchronous>, transform_indices = @transform_5, window_bounds = array<i64: 32, 32>}, {pipeline_mode = #tpu.pipeline_mode<synchronous>, transform_indices = @transform_6, window_bounds = array<i64: 32, 128>}, {pipeline_mode = #tpu.pipeline_mode<synchronous>, transform_indices = @transform_7, window_bounds = array<i64: 128, 32>}, {transform_indices = @transform_8, window_bounds = array<i64: 1, 8, 32>}]} {
    %c0 = arith.constant 0 : index
    %c0_0 = arith.constant 0 : index
    %c0_1 = arith.constant 0 : index
    %c0_2 = arith.constant 0 : index
    %0 = vector.load %arg3[%c0, %c0_0, %c0_1, %c0_2] : memref<1x4x8x8xbf16, #tpu.memory_space<vmem>>, vector<1x4x8x8xbf16>
    %1 = vector.shape_cast %0 : vector<1x4x8x8xbf16> to vector<4x8x8xbf16>
    %c0_3 = arith.constant 0 : index
    %c0_4 = arith.constant 0 : index
    %c0_5 = arith.constant 0 : index
    %c0_6 = arith.constant 0 : index
    %2 = vector.load %arg4[%c0_3, %c0_4, %c0_5, %c0_6] : memref<1x4x8x8xbf16, #tpu.memory_space<vmem>>, vector<1x4x8x8xbf16>
    %3 = vector.shape_cast %2 : vector<1x4x8x8xbf16> to vector<4x8x8xbf16>
    %c0_7 = arith.constant 0 : index
    %c0_8 = arith.constant 0 : index
    %c0_9 = arith.constant 0 : index
    %c0_10 = arith.constant 0 : index
    %4 = vector.load %arg5[%c0_7, %c0_8, %c0_9, %c0_10] : memref<1x4x8x8xbf16, #tpu.memory_space<vmem>>, vector<1x4x8x8xbf16>
    %5 = vector.shape_cast %4 : vector<1x4x8x8xbf16> to vector<4x8x8xbf16>
    "tpu.trace_start"() <{level = 10 : i32, message = "hqd,hkd->hqk"}> : () -> ()
    %cst = arith.constant dense<0.000000e+00> : vector<4x8x8xf32>
    %6 = tpu.matmul %1, %3, %cst {dimension_numbers = #tpu.dot_dimension_numbers<[2], [2], [1], [1], [0, 0, 0, 1, 1, 1], [0], [0]>} : vector<4x8x8xbf16>, vector<4x8x8xbf16>, vector<4x8x8xf32> -> vector<4x8x8xf32>
    "tpu.trace_stop"() : () -> ()
    %cst_11 = arith.constant dense<0xFF800000> : vector<4x8xf32>
    %7 = vector.multi_reduction <maximumf>, %6, %cst_11 [2] : vector<4x8x8xf32> to vector<4x8xf32>
    %8 = vector.shape_cast %7 : vector<4x8xf32> to vector<4x8x1xf32>
    %9 = vector.broadcast %8 : vector<4x8x1xf32> to vector<4x8x8xf32>
    %10 = arith.subf %6, %9 : vector<4x8x8xf32>
    %11 = math.exp %10 : vector<4x8x8xf32>
    %cst_12 = arith.constant dense<0.000000e+00> : vector<4x8xf32>
    %12 = vector.multi_reduction <add>, %11, %cst_12 [2] : vector<4x8x8xf32> to vector<4x8xf32>
    %13 = vector.shape_cast %12 : vector<4x8xf32> to vector<4x8x1xf32>
    %14 = tpu.reciprocal %13 {approx = true} : vector<4x8x1xf32> -> vector<4x8x1xf32>
    %15 = vector.broadcast %14 : vector<4x8x1xf32> to vector<4x8x8xf32>
    %16 = arith.mulf %11, %15 : vector<4x8x8xf32>
    %17 = arith.truncf %16 : vector<4x8x8xf32> to vector<4x8x8xbf16>
    "tpu.trace_start"() <{level = 10 : i32, message = "hqk,hkd->hqd"}> : () -> ()
    %cst_13 = arith.constant dense<0.000000e+00> : vector<4x8x8xf32>
    %18 = tpu.matmul %17, %5, %cst_13 {dimension_numbers = #tpu.dot_dimension_numbers<[2], [1], [1], [2], [0, 0, 0, 1, 1, 2], [0], [0]>} : vector<4x8x8xbf16>, vector<4x8x8xbf16>, vector<4x8x8xf32> -> vector<4x8x8xf32>
    "tpu.trace_stop"() : () -> ()
    %19 = vector.extract_strided_slice %18 {offsets = [0, 0, 0], sizes = [1, 8, 8], strides = [1, 1, 1]} : vector<4x8x8xf32> to vector<1x8x8xf32>
    %20 = vector.shape_cast %19 : vector<1x8x8xf32> to vector<8x8xf32>
    %c0_14 = arith.constant 0 : index
    %c0_15 = arith.constant 0 : index
    %21 = vector.load %arg11[%c0_14, %c0_15] : memref<8x32xf32, #tpu.memory_space<vmem>>, vector<8x8xf32>
    tpu.vector_store %arg11[%c0_14, %c0_15], %20 {strides = array<i32>} : memref<8x32xf32, #tpu.memory_space<vmem>>, vector<8x8xf32>,
    %22 = vector.extract_strided_slice %18 {offsets = [1, 0, 0], sizes = [1, 8, 8], strides = [1, 1, 1]} : vector<4x8x8xf32> to vector<1x8x8xf32>
    %23 = vector.shape_cast %22 : vector<1x8x8xf32> to vector<8x8xf32>
    %c0_16 = arith.constant 0 : index
    %c8 = arith.constant 8 : index
    %24 = vector.load %arg11[%c0_16, %c8] : memref<8x32xf32, #tpu.memory_space<vmem>>, vector<8x8xf32>
    tpu.vector_store %arg11[%c0_16, %c8], %23 {strides = array<i32>} : memref<8x32xf32, #tpu.memory_space<vmem>>, vector<8x8xf32>,
    %25 = vector.extract_strided_slice %18 {offsets = [2, 0, 0], sizes = [1, 8, 8], strides = [1, 1, 1]} : vector<4x8x8xf32> to vector<1x8x8xf32>
    %26 = vector.shape_cast %25 : vector<1x8x8xf32> to vector<8x8xf32>
    %c0_17 = arith.constant 0 : index
    %c16 = arith.constant 16 : index
    %27 = vector.load %arg11[%c0_17, %c16] : memref<8x32xf32, #tpu.memory_space<vmem>>, vector<8x8xf32>
    tpu.vector_store %arg11[%c0_17, %c16], %26 {strides = array<i32>} : memref<8x32xf32, #tpu.memory_space<vmem>>, vector<8x8xf32>,
    %28 = vector.extract_strided_slice %18 {offsets = [3, 0, 0], sizes = [1, 8, 8], strides = [1, 1, 1]} : vector<4x8x8xf32> to vector<1x8x8xf32>
    %29 = vector.shape_cast %28 : vector<1x8x8xf32> to vector<8x8xf32>
    %c0_18 = arith.constant 0 : index
    %c24 = arith.constant 24 : index
    %30 = vector.load %arg11[%c0_18, %c24] : memref<8x32xf32, #tpu.memory_space<vmem>>, vector<8x8xf32>
    tpu.vector_store %arg11[%c0_18, %c24], %29 {strides = array<i32>} : memref<8x32xf32, #tpu.memory_space<vmem>>, vector<8x8xf32>,
    %c0_19 = arith.constant 0 : index
    %c0_20 = arith.constant 0 : index
    %31 = vector.load %arg11[%c0_19, %c0_20] : memref<8x32xf32, #tpu.memory_space<vmem>>, vector<8x32xf32>
    %32 = arith.truncf %31 : vector<8x32xf32> to vector<8x32xbf16>
    %c0_21 = arith.constant 0 : index
    %c0_22 = arith.constant 0 : index
    %33 = vector.load %arg7[%c0_21, %c0_22] : memref<32x32xbf16, #tpu.memory_space<vmem>>, vector<32x32xbf16>
    %cst_23 = arith.constant dense<0.000000e+00> : vector<8x32xf32>
    %34 = tpu.matmul %32, %33, %cst_23 {dimension_numbers = #tpu.dot_dimension_numbers<[1], [0], [0], [1], [0, 0, 1, 1], [], []>} : vector<8x32xbf16>, vector<32x32xbf16>, vector<8x32xf32> -> vector<8x32xf32>
    %c0_24 = arith.constant 0 : index
    %c0_25 = arith.constant 0 : index
    %c0_26 = arith.constant 0 : index
    %35 = vector.load %arg2[%c0_24, %c0_25, %c0_26] : memref<1x8x32xf32, #tpu.memory_space<vmem>>, vector<1x8x32xf32>
    %36 = vector.shape_cast %35 : vector<1x8x32xf32> to vector<8x32xf32>
    %37 = arith.addf %36, %34 : vector<8x32xf32>
    %38 = arith.mulf %37, %37 : vector<8x32xf32>
    %cst_27 = arith.constant dense<0.000000e+00> : vector<8xf32>
    %39 = vector.multi_reduction <add>, %38, %cst_27 [1] : vector<8x32xf32> to vector<8xf32>
    %40 = vector.shape_cast %39 : vector<8xf32> to vector<8x1xf32>
    %cst_28 = arith.constant 3.200000e+01 : f32
    %41 = vector.broadcast %cst_28 : f32 to vector<8x1xf32>
    %42 = arith.divf %40, %41 : vector<8x1xf32>
    %cst_29 = arith.constant 9.99999997E-7 : f32
    %43 = vector.broadcast %cst_29 : f32 to vector<8x1xf32>
    %44 = arith.addf %42, %43 : vector<8x1xf32>
    %45 = math.rsqrt %44 : vector<8x1xf32>
    %46 = vector.broadcast %45 : vector<8x1xf32> to vector<8x32xf32>
    %47 = arith.mulf %37, %46 : vector<8x32xf32>
    %c0_30 = arith.constant 0 : index
    %c0_31 = arith.constant 0 : index
    %48 = vector.load %arg6[%c0_30, %c0_31] : memref<1x32xf32, #tpu.memory_space<vmem>>, vector<1x32xf32>
    %49 = vector.broadcast %48 : vector<1x32xf32> to vector<8x32xf32>
    %50 = arith.mulf %47, %49 : vector<8x32xf32>
    %51 = arith.truncf %50 : vector<8x32xf32> to vector<8x32xbf16>
    %c0_32 = arith.constant 0 : index
    %c0_33 = arith.constant 0 : index
    %52 = vector.load %arg8[%c0_32, %c0_33] : memref<32x128xbf16, #tpu.memory_space<vmem>>, vector<32x128xbf16>
    %cst_34 = arith.constant dense<0.000000e+00> : vector<8x128xf32>
    %53 = tpu.matmul %51, %52, %cst_34 {dimension_numbers = #tpu.dot_dimension_numbers<[1], [0], [0], [1], [0, 0, 1, 1], [], []>} : vector<8x32xbf16>, vector<32x128xbf16>, vector<8x128xf32> -> vector<8x128xf32>
    %cst_35 = arith.constant 0.000000e+00 : f32
    %54 = vector.broadcast %cst_35 : f32 to vector<8x128xf32>
    %55 = arith.subf %54, %53 : vector<8x128xf32>
    %56 = math.exp %55 : vector<8x128xf32>
    %cst_36 = arith.constant 1.000000e+00 : f32
    %57 = vector.broadcast %cst_36 : f32 to vector<8x128xf32>
    %58 = arith.addf %57, %56 : vector<8x128xf32>
    %59 = tpu.reciprocal %58 {approx = true} : vector<8x128xf32> -> vector<8x128xf32>
    %60 = arith.mulf %53, %59 : vector<8x128xf32>
    %61 = arith.truncf %60 : vector<8x128xf32> to vector<8x128xbf16>
    %c0_37 = arith.constant 0 : index
    %c0_38 = arith.constant 0 : index
    %62 = vector.load %arg9[%c0_37, %c0_38] : memref<128x32xbf16, #tpu.memory_space<vmem>>, vector<128x32xbf16>
    %cst_39 = arith.constant dense<0.000000e+00> : vector<8x32xf32>
    %63 = tpu.matmul %61, %62, %cst_39 {dimension_numbers = #tpu.dot_dimension_numbers<[1], [0], [0], [1], [0, 0, 1, 1], [], []>} : vector<8x128xbf16>, vector<128x32xbf16>, vector<8x32xf32> -> vector<8x32xf32>
    %64 = arith.addf %37, %63 : vector<8x32xf32>
    %c0_40 = arith.constant 0 : index
    %c0_41 = arith.constant 0 : index
    %c0_42 = arith.constant 0 : index
    %65 = vector.load %arg10[%c0_40, %c0_41, %c0_42] : memref<1x8x32xf32, #tpu.memory_space<vmem>>, vector<1x8x32xf32>
    %66 = vector.shape_cast %65 : vector<1x8x32xf32> to vector<8x32xf32>
    %67 = vector.shape_cast %64 : vector<8x32xf32> to vector<1x8x32xf32>
    tpu.vector_store %arg10[%c0_40, %c0_41, %c0_42], %67 {strides = array<i32>} : memref<1x8x32xf32, #tpu.memory_space<vmem>>, vector<1x8x32xf32>,
    return
  }
  func.func @transform_0(%arg0: i32, %arg1: i32) -> (i32, i32, i32) {
    %c0_i32 = arith.constant 0 : i32
    %c0_i32_0 = arith.constant 0 : i32
    return %arg0, %arg1, %c0_i32 : i32, i32, i32
  }
  func.func @transform_1(%arg0: i32, %arg1: i32) -> (i32, i32, i32, i32) {
    %c0_i32 = arith.constant 0 : i32
    %c0_i32_0 = arith.constant 0 : i32
    %c0_i32_1 = arith.constant 0 : i32
    return %arg0, %c0_i32, %arg1, %c0_i32_0 : i32, i32, i32, i32
  }
  func.func @transform_2(%arg0: i32, %arg1: i32) -> (i32, i32, i32, i32) {
    %c0_i32 = arith.constant 0 : i32
    %c0_i32_0 = arith.constant 0 : i32
    %c0_i32_1 = arith.constant 0 : i32
    %c0_i32_2 = arith.constant 0 : i32
    return %arg0, %c0_i32, %c0_i32_0, %c0_i32_1 : i32, i32, i32, i32
  }
  func.func @transform_3(%arg0: i32, %arg1: i32) -> (i32, i32, i32, i32) {
    %c0_i32 = arith.constant 0 : i32
    %c0_i32_0 = arith.constant 0 : i32
    %c0_i32_1 = arith.constant 0 : i32
    %c0_i32_2 = arith.constant 0 : i32
    return %arg0, %c0_i32, %c0_i32_0, %c0_i32_1 : i32, i32, i32, i32
  }
  func.func @transform_4(%arg0: i32, %arg1: i32) -> (i32, i32) {
    %c0_i32 = arith.constant 0 : i32
    %c0_i32_0 = arith.constant 0 : i32
    %c0_i32_1 = arith.constant 0 : i32
    return %c0_i32, %c0_i32_0 : i32, i32
  }
  func.func @transform_5(%arg0: i32, %arg1: i32) -> (i32, i32) {
    %c0_i32 = arith.constant 0 : i32
    %c0_i32_0 = arith.constant 0 : i32
    %c0_i32_1 = arith.constant 0 : i32
    return %c0_i32, %c0_i32_0 : i32, i32
  }
  func.func @transform_6(%arg0: i32, %arg1: i32) -> (i32, i32) {
    %c0_i32 = arith.constant 0 : i32
    %c0_i32_0 = arith.constant 0 : i32
    %c0_i32_1 = arith.constant 0 : i32
    return %c0_i32, %c0_i32_0 : i32, i32
  }
  func.func @transform_7(%arg0: i32, %arg1: i32) -> (i32, i32) {
    %c0_i32 = arith.constant 0 : i32
    %c0_i32_0 = arith.constant 0 : i32
    %c0_i32_1 = arith.constant 0 : i32
    return %c0_i32, %c0_i32_0 : i32, i32
  }
  func.func @transform_8(%arg0: i32, %arg1: i32) -> (i32, i32, i32) {
    %c0_i32 = arith.constant 0 : i32
    %c0_i32_0 = arith.constant 0 : i32
    return %arg0, %arg1, %c0_i32 : i32, i32, i32
  }
}

</mosaic_0001>

<bundles_post_ra>
// kernel: tile.11
= control target key start
LH: loop header
LB: loop body
LE: loop exit
PB: predicated region body
PF: predicated region fallthrough
CT: control target
= control target key end

     0   :  { %vm42_vm0 = vcmask 1047556   ;;  %vm44_vm1 = vcmask 64512   ;;  %s93_s22 = smov 8   ;;  %s94_s25 = smov 16   ;;  %vm54_vm2 = vcmask 261312   ;;  %vm64_vm3 = vcmask 195712   ;;  %s146_s0 = inlined_call_operand.vmem [shape: f32[8,4,8], index: 0, kind: input, shape index: {}]   ;;  %s147_s1 = inlined_call_operand.vmem [shape: f32[8,32], index: 1, kind: output, shape index: {}]  }
   0x1   :  { %v82_v0 = vld [vmem:[%s146_s0 + $0x1c] sm:$0xf]  ;;  %v83_v1 = vld [vmem:[%s146_s0 + $0x18] sm:$0xf]  ;;  %v84_v2 = vld [vmem:[%s146_s0 + $0x14] sm:$0xf] }
   0x2   :  { %8 = vst [vmem:[#allocation0 + $0x38] sm:$0xf] %v82_v0  ;;  %13 = vst [vmem:[#allocation0 + $0x30] sm:$0xf] %v83_v1  ;;  %v85_v3 = vld [vmem:[%s146_s0 + $0x10] sm:$0xf] }
   0x3   :  { %18 = vst [vmem:[#allocation0 + $0x28] sm:$0xf] %v84_v2  ;;  %v86_v4 = vld [vmem:[%s146_s0 + $0xc] sm:$0xf]  ;;  %v87_v5 = vld [vmem:[%s146_s0 + $0x8] sm:$0xf] }
   0x4   :  { %23 = vst [vmem:[#allocation0 + $0x20] sm:$0xf] %v85_v3  ;;  %28 = vst [vmem:[#allocation0 + $0x18] sm:$0xf] %v86_v4  ;;  %v88_v6 = vld [vmem:[%s146_s0 + $0x4] sm:$0xf] }
   0x5   :  { %33 = vst [vmem:[#allocation0 + $0x10] sm:$0xf] %v87_v5  ;;  %v38_v7 = vld [vmem:[%s146_s0] sm:$0xf]  ;;  %37 = vst [vmem:[#allocation0 + $0x8] sm:$0xf] %v88_v6 }
   0x6   :  { %39 = vst [vmem:[#allocation0] sm:$0xf] %v38_v7  ;;  %s92_s0 = smov 24   ;;  %vm74_vm4 = vcmask 130112  }
   0xb   :  { %v49_v8 = vld [vmem:[#allocation0 + $0x3] ss:$8 sm:$0xf0]   ;;  %v59_v9 = vld [vmem:[#allocation0 + $0x2] ss:$8 sm:$0xf0]  }
   0xc   :  { %v69_v14 = vld [vmem:[#allocation0 + $0x1] ss:$8 sm:$0xf0]   ;;  %v41_v17 = vld [vmem:[#allocation0] ss:$8 sm:$0xf0]  }
   0xd   :  { %v47_v10 = vld [vmem:[#allocation0 + $0x3] ss:$8 sm:$0xf]   ;;  %v57_v11 = vld [vmem:[#allocation0 + $0x2] ss:$8 sm:$0xf]  }
   0xe   :  { %v51_v12 = vsel %vm42_vm0, %v49_v8, %v47_v10  ;;  %v67_v13 = vld [vmem:[#allocation0 + $0x1] ss:$8 sm:$0xf]   ;;  %v40_v16 = vld [vmem:[#allocation0] ss:$8 sm:$0xf]   ;;  %v61_v18 = vsel %vm42_vm0, %v59_v9, %v57_v11 }
   0xf   :  { %52 = vrot.lane.b32.xlu0 %v51_v12, %s92_s0  ;;  %v71_v15 = vsel %vm42_vm0, %v69_v14, %v67_v13  ;;  %v43_v19 = vsel %vm42_vm0, %v41_v17, %v40_v16 }
  0x10   :  { %72 = vrot.lane.b32.xlu1 %v71_v15, %s93_s22  ;;  %45 = vst.msk [vmem:[%s147_s1] sm:$0xff] %vm44_vm1, %v43_v19  }
  0x13   :  { %62 = vrot.lane.b32.xlu0 %v61_v18, %s94_s25 }
  0x81   :  { %v53_v20 = vpop.permute.xlu0 %52  }
  0x82   :  { %55 = vst.msk [vmem:[%s147_s1] sm:$0xff] %vm54_vm2, %v53_v20   ;;  %v73_v21 = vpop.permute.xlu1 %72  }
  0x85   :  { %v63_v22 = vpop.permute.xlu0 %62  }
  0x86   :  { %65 = vst.msk [vmem:[%s147_s1] sm:$0xff] %vm64_vm3, %v63_v22  }
  0x87   :  { %75 = vst.msk [vmem:[%s147_s1] sm:$0xff] %vm74_vm4, %v73_v21  }

// kernel: transformer_block.2
= control target key start
LH: loop header
LB: loop body
LE: loop exit
PB: predicated region body
PF: predicated region fallthrough
CT: control target
= control target key end

     0   :  { %s1083_s27 = smov 0   ;;  %s1085_s28 = smov 0   ;;  %s1195_s0 = inlined_call_operand.vmem [shape: f32[2,8,32], index: 0, kind: input, shape index: {}]   ;;  %s1196_s1 = inlined_call_operand.vmem [shape: f32[1,32], index: 1, kind: input, shape index: {}]   ;;  %s1197_s2 = inlined_call_operand.vmem [shape: bf16[32,96], index: 2, kind: input, shape index: {}]   ;;  %s1198_s3 = inlined_call_operand.vmem [shape: f32[8,32], index: 3, kind: input, shape index: {}]   ;;  %s1199_s4 = inlined_call_operand.vmem [shape: f32[8,32], index: 4, kind: input, shape index: {}]   ;;  %s1200_s5 = inlined_call_operand.vmem [shape: bf16[32,32], index: 5, kind: input, shape index: {}]   ;;  %s1201_s6 = inlined_call_operand.vmem [shape: bf16[2,4,8,8], index: 6, kind: output, shape index: {0}]   ;;  %s1202_s7 = inlined_call_operand.vmem [shape: bf16[2,4,8,8], index: 7, kind: output, shape index: {1}]   ;;  %s1203_s8 = inlined_call_operand.vmem [shape: bf16[2,4,8,8], index: 8, kind: output, shape index: {2}]  }
   0x1   :  { %s1087_s29 = smov 0  }
   0x2 LB: > { %s31_s30 = sadd.s32 1, %s1018_s28  ;;  %p887_p0 = scmp.ge.s32.totalorder %s1022_s29, 1  ;;  %s1022_s29 = sphi %s1087_s29, %s19_s29   ;;  %s1018_s28 = sphi %s1085_s28, %s1205_s28   ;;  %s1014_s27 = sphi %s1083_s27, %s1204_s27  }
   0x3   : > { %p33_p1 = scmp.ge.s32.totalorder %s31_s30, 2  ;;  %p307_p2 = scmp.lt.s32.totalorder %s1022_s29, 3 }
   0x5   : > { %s1207_s30 = smov (%p33_p1, %s31_s30), 0  ;;  %p308_p3 = pnand %p887_p0, %p307_p2 }
   0x6   : > { %p370_p4 = scmp.lt.s32.totalorder (!%p308_p3), %s1014_s27, 1  ;;  %vm412_vm0 = vcmask (!%p308_p3), 261120   ;;  %v994_v3 = vld [vmem:[%s1197_s2] sm:$0xff] (!%p308_p3)   ;;  %v1024_v4 = vmov (!%p308_p3), 0.0   ;;  %vm1025_vm1 = vmmov (!%p308_p3), 0   ;;  %v995_v5 = vld [vmem:[%s1197_s2 + $0x8] sm:$0xff] (!%p308_p3)  }
   0x7   : > { %311 = sbr.rel (%p308_p3) target bundleno = 974 (0x3ce), region = 44  ;;  %932 = vmatprep.subr.bf16.mxu0 (!%p308_p3), %v1024_v4  ;;  %936 = vmatprep.mubr.msk.bf16.mxu0 (!%p308_p3), %vm1025_vm1, %v1024_v4  ;;  %v489_v6 = vld [vmem:[%s1198_s3] sm:$0xff] (!%p308_p3)  ;;  %s1026_s21 = smov (!%p308_p3), 32   ;;  %v997_v16 = vld [vmem:[%s1200_s5 + $0x8] sm:$0xff] (!%p308_p3)   ;;  %vm612_vm2 = vcmask (!%p308_p3), 60416  }
   0x8   : > { %933 = vmatpush3.bf16.msra.mxu0 (!%p308_p3), %v994_v3  ;;  %940 = vmatprep.subr.bf16.mxu1 (!%p308_p3), %v1024_v4  ;;  %v996_v7 = vld [vmem:[%s1200_s5] sm:$0xff] (!%p308_p3)   ;;  %s1027_s26 = smov (!%p308_p3), 96   ;;  %s1028_s15 = smov (!%p308_p3), 112  }
   0x9   : > { %934 = vmatprep.subr.bf16.mxu0 (!%p308_p3), %v1024_v4  ;;  %944 = vmatprep.mubr.msk.bf16.mxu1 (!%p308_p3), %vm1025_vm1, %v1024_v4  ;;  %v895_v12 = vld [vmem:[%s1196_s1] ss:$0 sm:$0xff] (!%p308_p3)  ;;  %s1030_s16 = smov (!%p308_p3), 64   ;;  %s1031_s20 = smov (!%p308_p3), 120  }
   0xa   : > { %601 = vrot.lane.b32.xlu1 (!%p308_p3), %v489_v6, %s1026_s21  ;;  %941 = vmatpush3.bf16.msra.mxu1 (!%p308_p3), %v996_v7  ;;  %v490_v23 = vld [vmem:[%s1199_s4] sm:$0xff] (!%p308_p3)  ;;  %s1033_s22 = smov (!%p308_p3), 104   ;;  %s1034_s23 = smov (!%p308_p3), 72  }
   0xb   : > { %942 = vmatprep.subr.bf16.mxu1 (!%p308_p3), %v1024_v4  ;;  %s1035_s24 = smov (!%p308_p3), 88   ;;  %s1036_s25 = smov (!%p308_p3), 80  }
   0xc   : > { %935 = vmatpush3.bf16.msra.mxu0 (!%p308_p3), %v995_v5 }
   0xd   : > { %948 = vmatprep.subr.bf16.mxu0 (!%p308_p3), %v1024_v4 }
   0xe   : > { %s1209_s27 = smov (!%p370_p4, %s1014_s27), 1  ;;  %943 = vmatpush3.bf16.msra.mxu1 %v997_v16 }
   0xf   : > { %s888_s9 = sshll.u32 %s1209_s27, 3  ;;  %s1142_s11 = sshll.u32 %s1209_s27, 4 }
  0x10   : > { %s376_s12 = scalar_lea.vmem %s1195_s0, %s888_s9  ;;  %s1148_s14 = scalar_lea.vmem %s1201_s6, %s1142_s11 }
  0x11   : > { %v410_v0 = vld [vmem:[%s376_s12] sm:$0xff]  ;;  %s1029_s27 = smov 48   ;;  %s1161_s19 = scalar_lea.vmem %s1203_s8, %s1142_s11 }
  0x12   : > { %v411_v1 = vmul.f32 %v410_v0, %v410_v0  ;;  %s1037_s9 = smov 40  }
  0x14   : > { %v413_v2 = vsel %vm412_vm0, %v411_v1, 0.0 }
  0x15   : > { %414 = vadd.xlane.f32.xlu0 %v413_v2 }
  0x7c   : > { %v602_v39 = vpop.permute.xlu1 %601 }
  0xa2   : > { %v415_v8 = vpop.xlane.xlu0 %414 }
  0xa3   : > { %v417_v9 = vmul.f32 0.03125, %v415_v8 }
  0xa5   : > { %v418_v10 = vadd.f32 1e-06, %v417_v9 }
  0xa7   : > { %998 = vrsqrt.f32 %v418_v10 }
  0xb1   : > { %v999_v11 = vpop.eup %998 }
  0xb2   : > { %v420_v13 = vmul.f32 %v999_v11, %v410_v0 }
  0xb4   : > { %v428_v14 = vmul.f32 %v895_v12, %v420_v13 }
  0xb6   : > { %v429_v15 = vpack.c.bf16 %v428_v14, %v428_v14 }
  0xb8   : > { %937 = vmatmul.mubr.msk.bf16.vlgmr.msra.gmra.mrb[0].mxu0 %vm412_vm0, %v429_v15 }
  0xb9   : > { %949 = vmatpush3.bf16.msra.mxu0 %v996_v7  ;;  %952 = vmatprep.mubr.msk.bf16.mxu0 %vm1025_vm1, %v1024_v4 }
  0xba   : > { %950 = vmatprep.subr.bf16.mxu0 %v1024_v4 }
  0xbd   : > { %951 = vmatpush3.bf16.msra.mxu0 %v997_v16 }
 0x18b   : > { %v483_v17 = vpop.f32.mrb[0].mxu0 }
 0x18c   : > { %v1131_v18 = vpack.c.bf16 %v483_v17, %v483_v17  ;;  %v938_v19 = vpop.f32.mrb[1].mxu0  ;;  %v597_v25 = vmul.f32 %v489_v6, %v483_v17  ;;  %v604_v40 = vmul.f32 %v602_v39, %v483_v17 }
 0x18d   : > { %v486_v20 = vpop.f32.mrb[2].mxu0 }
 0x18e   : > { %552 = vrot.lane.b32.xlu0 %v1131_v18, %s1027_s26  ;;  %v939_v21 = vpop.f32.mrb[3].mxu0  ;;  %945 = vmatmul.mubr.msk.bf16.vlgmr.msra.gmra.mrb[0].mxu1 %vm412_vm0, %v1131_v18 }
 0x200   : > { %v553_v22 = vpop.permute.xlu0 %552 }
 0x201   : > { %953 = vmatmul.mubr.msk.bf16.vlgmr.msra.gmra.mrb[4].mxu0 %vm412_vm0, %v553_v22 }
 0x261   : > { %v545_v24 = vpop.f32.mrb[0].mxu1 }
 0x262   : > { %v598_v26 = vmul.f32 %v545_v24, %v490_v23  ;;  %v946_v27 = vpop.f32.mrb[1].mxu1 }
 0x263   : > { %v548_v28 = vpop.f32.mrb[2].mxu1 }
 0x264   : > { %v599_v29 = vadd.f32 %v598_v26, %v597_v25  ;;  %v947_v30 = vpop.f32.mrb[3].mxu1 }
 0x266   : > { %v611_v31 = vpack.c.bf16 %v599_v29, %v599_v29 }
 0x268   : > { %646 = vrot.lane.b32.xlu0 %v611_v31, %s1028_s15  ;;  %613 = vst.msk [vmem:[%s1148_s14] sm:$0xf] %vm612_vm2, %v611_v31 }
 0x26c   : > { %656 = vrot.lane.b32.xlu0 %v1131_v18, %s1029_s27 }
 0x2d4   : > { %v591_v32 = vpop.f32.mrb[4].mxu0 }
 0x2d5   : > { %v605_v33 = vmul.f32 %v591_v32, %v490_v23  ;;  %v954_v34 = vpop.f32.mrb[5].mxu0 }
 0x2d6   : > { %v594_v35 = vpop.f32.mrb[6].mxu0 }
 0x2d7   : > { %607 = vrot.lane.b32.xlu1 %v605_v33, %s1026_s21  ;;  %v955_v36 = vpop.f32.mrb[7].mxu0  ;;  %s1032_s21 = smov 56  }
 0x2da   : > { %v647_v37 = vpop.permute.xlu0 %646 }
 0x2db   : > { %909 = vst.msk [vmem:[%s1148_s14 + $0x8] sm:$0xf] %vm612_vm2, %v647_v37  ;;  %624 = vrot.lane.b32.xlu1 %v1131_v18, %s1030_s16 }
 0x2de   : > { %v657_v38 = vpop.permute.xlu0 %656 }
 0x2df   : > { %911 = vst.msk [vmem:[%s1161_s19 + $0x8] sm:$0xf] %vm612_vm2, %v657_v38  ;;  %631 = vrot.lane.b32.xlu1 %v611_v31, %s1031_s20 }
 0x2e3   : > { %641 = vrot.lane.b32.xlu1 %v1131_v18, %s1032_s21 }
 0x2e7   : > { %661 = vrot.lane.b32.xlu1 %v611_v31, %s1033_s22 }
 0x349   : > { %v608_v41 = vpop.permute.xlu1 %607 }
 0x34a   : > { %v610_v42 = vadd.f32 %v608_v41, %v604_v40 }
 0x34c   : > { %v920_v43 = vpack.c.bf16 %v610_v42, %v610_v42 }
 0x34d   : > { %v625_v44 = vpop.permute.xlu1 %624 }
 0x34e   : > { %627 = vst.msk [vmem:[%s1161_s19] sm:$0xf] %vm612_vm2, %v625_v44  ;;  %666 = vrot.lane.b32.xlu0 %v920_v43, %s1034_s23  ;;  %618 = vrot.lane.b32.xlu1 %v920_v43, %s1027_s26  ;;  %s400_s26 = scalar_lea.vmem %s1202_s7, %s1142_s11 }
 0x351   : > { %v632_v45 = vpop.permute.xlu1 %631 }
 0x352   : > { %906 = vst.msk [vmem:[%s1148_s14 + $0x4] sm:$0xf] %vm612_vm2, %v632_v45  ;;  %636 = vrot.lane.b32.xlu1 %v920_v43, %s1035_s24 }
 0x355   : > { %v642_v46 = vpop.permute.xlu1 %641 }
 0x356   : > { %908 = vst.msk [vmem:[%s1161_s19 + $0x4] sm:$0xf] %vm612_vm2, %v642_v46  ;;  %651 = vrot.lane.b32.xlu1 %v920_v43, %s1036_s25 }
 0x359   : > { %v662_v47 = vpop.permute.xlu1 %661 }
 0x35a   : > { %912 = vst.msk [vmem:[%s1148_s14 + $0xc] sm:$0xf] %vm612_vm2, %v662_v47  ;;  %671 = vrot.lane.b32.xlu1 %v1131_v18, %s1037_s9 }
 0x3c0   : > { %v667_v48 = vpop.permute.xlu0 %666  ;;  %v619_v49 = vpop.permute.xlu1 %618 }
 0x3c1   : > { %913 = vst.msk [vmem:[%s400_s26 + $0xc] sm:$0xf] %vm612_vm2, %v667_v48  ;;  %621 = vst.msk [vmem:[%s400_s26] sm:$0xf] %vm612_vm2, %v619_v49 }
 0x3c4   : > { %v637_v50 = vpop.permute.xlu1 %636 }
 0x3c5   : > { %907 = vst.msk [vmem:[%s400_s26 + $0x4] sm:$0xf] %vm612_vm2, %v637_v50 }
 0x3c8   : > { %v652_v51 = vpop.permute.xlu1 %651 }
 0x3c9   : > { %910 = vst.msk [vmem:[%s400_s26 + $0x8] sm:$0xf] %vm612_vm2, %v652_v51 }
 0x3cc   : > { %v672_v52 = vpop.permute.xlu1 %671 }
 0x3cd   : > { %914 = vst.msk [vmem:[%s1161_s19 + $0xc] sm:$0xf] %vm612_vm2, %v672_v52 }
 0x3ce PF: > { %s19_s29 = sadd.s32 1, %s1022_s29   ;;  %s1204_s27 = smov %s1018_s28 }
 0x3cf   : > { %p16_p5 = scmp.ge.s32.totalorder %s19_s29, 4   ;;  %s1205_s28 = smov %s1207_s30 }
 0x3d1   :  { %18 = sbr.rel (!%p16_p5) target bundleno = 2 (0x2), region = 113 }

// kernel: transformer_block.3
= control target key start
LH: loop header
LB: loop body
LE: loop exit
PB: predicated region body
PF: predicated region fallthrough
CT: control target
= control target key end

     0   :  { %13 = vsyncpa [#allocation4], 0  ;;  %s1854_s0 = inlined_call_operand.vmem [shape: f32[2,8,32], index: 0, kind: input, shape index: {}]   ;;  %s1855_s1 = inlined_call_operand.vmem [shape: bf16[2,4,8,8], index: 1, kind: input, shape index: {}]   ;;  %s1856_s2 = inlined_call_operand.vmem [shape: bf16[2,4,8,8], index: 2, kind: input, shape index: {}]   ;;  %s1857_s3 = inlined_call_operand.vmem [shape: bf16[2,4,8,8], index: 3, kind: input, shape index: {}]   ;;  %s1858_s4 = inlined_call_operand.vmem [shape: f32[1,32], index: 4, kind: input, shape index: {}]   ;;  %s1859_s5 = inlined_call_operand.vmem [shape: bf16[32,32], index: 5, kind: input, shape index: {}]   ;;  %s1860_s6 = inlined_call_operand.vmem [shape: bf16[32,128], index: 6, kind: input, shape index: {}]   ;;  %s1861_s7 = inlined_call_operand.vmem [shape: bf16[128,32], index: 7, kind: input, shape index: {}]   ;;  %s1862_s8 = inlined_call_operand.hbm [shape: f32[2,8,32], index: 8, kind: output, shape index: {}]  }
   0x1   :  { %15 = vsyncpa [#allocation4 + $0x1], 0  ;;  %s1612_s27 = smov 0   ;;  %s1614_s28 = smov 0  }
   0x2   :  { %s1616_s29 = smov 0   ;;  %s1618_s30 = smov 0  }
   0x3   :  { %s1620_s9 = smov 0   ;;  %s1622_s10 = smov 0  }
   0x4 LB: > { %s1229_s11 = sadd.s32 4294967295, %s1559_s10   ;;  %s1230_s12 = sadd.s32 4294967294, %s1559_s10   ;;  %s1559_s10 = sphi %s1622_s10, %s21_s10   ;;  %s1555_s9 = sphi %s1620_s9, %s1869_s9   ;;  %s1551_s30 = sphi %s1618_s30, %s1868_s30   ;;  %s1547_s29 = sphi %s1616_s29, %s1867_s29   ;;  %s1543_s28 = sphi %s1614_s28, %s1866_s28   ;;  %s1539_s27 = sphi %s1612_s27, %s1865_s27  }
   0x5   : > { %s33_s13 = sadd.s32 1, %s1555_s9  ;;  %s234_s14 = sadd.s32 1, %s1547_s29 }
   0x6   : > { %p35_p0 = scmp.ge.s32.totalorder %s33_s13, 2  ;;  %p244_p1 = scmp.ne.s32.totalorder %s1547_s29, %s1543_s28 }
   0x7   : > { %p245_p2 = scmp.eq.s32.totalorder %s1229_s11, 1  ;;  %p250_p3 = scmp.ne.s32.totalorder %s1543_s28, %s1539_s27 }
   0x8   : > { %s1871_s13 = smov (%p35_p0, %s33_s13), 0  ;;  %p251_p5 = scmp.eq.s32.totalorder %s1230_s12, 1 }
   0x9   : > { %p1652_p4 = por %p245_p2, %p244_p1  ;;  %s229_s16 = ssub.s32 %s1555_s9, %s1871_s13 }
   0xa   : > { %p1233_p6 = scmp.ge.s32.totalorder %s1559_s10, 1  ;;  %p232_p7 = scmp.eq.s32.totalorder %s229_s16, 0 }
   0xb   : > { %p1659_p8 = por %p251_p5, %p250_p3  ;;  %p318_p9 = scmp.lt.s32.totalorder %s1559_s10, 3 }
   0xc   : > { %s1665_s18 = scalar_select %p232_p7, %s1547_s29, %s234_s14  }
   0xd   : > { %p319_p10 = pnand %p1233_p6, %p318_p9 }
   0xe   : > { %p372_p11 = scmp.lt.s32.totalorder (!%p319_p10), %s1551_s30, 1  ;;  %v1561_v0 = vmov (!%p319_p10), 0.0   ;;  %vm1562_vm0 = vmmov (!%p319_p10), 0   ;;  %vm410_vm1 = vcmask (!%p319_p10), 64512   ;;  %vm646_vm2 = vcmask (!%p319_p10), 1043456   ;;  %s1563_s16 = smov (!%p319_p10), 8  }
   0xf   : > { %322 = sbr.rel (%p319_p10) target bundleno = 1776 (0x6f0), region = 52  ;;  %1303 = vmatprep.subr.bf16.mxu1 (!%p319_p10), %v1561_v0  ;;  %1305 = vmatprep.mubr.msk.bf16.mxu1 (!%p319_p10), %vm1562_vm0, %v1561_v0  ;;  %s1564_s24 = smov (!%p319_p10), 16   ;;  %vm833_vm3 = vcmask (!%p319_p10), 130112   ;;  %vm839_vm4 = vcmask (!%p319_p10), 195712   ;;  %vm845_vm5 = vcmask (!%p319_p10), 261312   ;;  %vm865_vm6 = vcmask (!%p319_p10), 261120  }
  0x10   : > { %1327 = vmatprep.subr.bf16.mxu0 (!%p319_p10), %v1561_v0  ;;  %1329 = vmatprep.mubr.msk.bf16.mxu0 (!%p319_p10), %vm1562_vm0, %v1561_v0  ;;  %s1565_s25 = smov (!%p319_p10), 24   ;;  %s369_s12 = sand.u32 (!%p319_p10), 1, %s1543_s28  }
  0x16   : > { %s1672_s19 = scalar_select %p372_p11, %s1551_s30, 1 }
  0x18   : > { %s1678_s20 = sshll.u32 %s1672_s19, 4 }
  0x19   : > { %s391_s23 = scalar_lea.vmem %s1856_s2, %s1678_s20  ;;  %s386_s26 = scalar_lea.vmem %s1855_s1, %s1678_s20 }
  0x1a   : > { %v402_v1 = vld [vmem:[%s391_s23] sm:$0xf]  ;;  %v403_v3 = vld [vmem:[%s391_s23 + $0x4] sm:$0xf]  ;;  %v404_v6 = vld [vmem:[%s391_s23 + $0x8] sm:$0xf]  ;;  %s396_s14 = scalar_lea.vmem %s1857_s3, %s1678_s20 }
  0x1b   : > { %v415_v2 = vsel %vm410_vm1, %v402_v1, 0  ;;  %v398_v4 = vld [vmem:[%s386_s26] sm:$0xf]  ;;  %v461_v5 = vsel %vm410_vm1, %v403_v3, 0  ;;  %v399_v7 = vld [vmem:[%s386_s26 + $0x4] sm:$0xf] }
  0x1c   : > { %1304 = vmatpush3.bf16.xpose.msra.mxu1 %v415_v2  ;;  %v507_v8 = vsel %vm410_vm1, %v404_v6, 0  ;;  %v405_v9 = vld [vmem:[%s391_s23 + $0xc] sm:$0xf]  ;;  %v400_v10 = vld [vmem:[%s386_s26 + $0x8] sm:$0xf] }
  0x1d   : > { %1309 = vmatprep.subr.bf16.mxu1 %v1561_v0  ;;  %v553_v11 = vsel %vm410_vm1, %v405_v9, 0  ;;  %v401_v12 = vld [vmem:[%s386_s26 + $0xc] sm:$0xf]  ;;  %v406_v53 = vld [vmem:[%s396_s14] sm:$0xf]  ;;  %s1235_s26 = sshll.u32 %s1672_s19, 3 }
  0x1e   : > { %v648_v54 = vsel %vm646_vm2, %v406_v53, 0  ;;  %v407_v55 = vld [vmem:[%s396_s14 + $0x4] sm:$0xf]  ;;  %v408_v57 = vld [vmem:[%s396_s14 + $0x8] sm:$0xf] }
  0x1f   : > { %1328 = vmatpush3.bf16.msra.mxu0 %v648_v54  ;;  %v694_v56 = vsel %vm646_vm2, %v407_v55, 0  ;;  %v740_v58 = vsel %vm646_vm2, %v408_v57, 0  ;;  %v409_v59 = vld [vmem:[%s396_s14 + $0xc] sm:$0xf]  ;;  %s378_s14 = scalar_lea.vmem %s1854_s0, %s1235_s26  ;;  %v1451_v55 = vld [vmem:[%s1861_s7] sm:$0xff]   ;;  %v1453_v57 = vld [vmem:[%s1861_s7 + $0x10] sm:$0xff]  }
  0x20   : > { %1339 = vmatprep.subr.bf16.mxu0 %v1561_v0  ;;  %v786_v60 = vsel %vm646_vm2, %v409_v59, 0  ;;  %v1455_v59 = vld [vmem:[%s1861_s7 + $0x20] sm:$0xff]  }
  0x23   : > { %1306 = vmatmul.mubr.msk.bf16.vlgmr.msra.gmra.mrb[0].mxu1 %vm410_vm1, %v398_v4 }
  0x24   : > { %1310 = vmatpush3.bf16.xpose.msra.mxu1 %v461_v5  ;;  %1311 = vmatprep.mubr.msk.bf16.mxu1 %vm1562_vm0, %v1561_v0 }
  0x25   : > { %1315 = vmatprep.subr.bf16.mxu1 %v1561_v0 }
  0x2b   : > { %1312 = vmatmul.mubr.msk.bf16.vlgmr.msra.gmra.mrb[4].mxu1 %vm410_vm1, %v399_v7 }
  0x2c   : > { %1316 = vmatpush3.bf16.xpose.msra.mxu1 %v507_v8  ;;  %1317 = vmatprep.mubr.msk.bf16.mxu1 %vm1562_vm0, %v1561_v0 }
  0x2d   : > { %1321 = vmatprep.subr.bf16.mxu1 %v1561_v0 }
  0x33   : > { %1318 = vmatmul.mubr.msk.bf16.vlgmr.msra.gmra.mrb[8].mxu1 %vm410_vm1, %v400_v10 }
  0x34   : > { %1322 = vmatpush3.bf16.xpose.msra.mxu1 %v553_v11  ;;  %1323 = vmatprep.mubr.msk.bf16.mxu1 %vm1562_vm0, %v1561_v0 }
  0x35   : > { %1333 = vmatprep.subr.bf16.mxu1 %v1561_v0 }
  0x3b   : > { %1324 = vmatmul.mubr.msk.bf16.vlgmr.msra.gmra.mrb[12].mxu1 %vm410_vm1, %v401_v12 }
  0x3c   : > { %1335 = vmatprep.mubr.msk.bf16.mxu1 %vm1562_vm0, %v1561_v0  ;;  %1334 = vmatpush3.bf16.msra.mxu1 %v694_v56  ;;  %v1452_v56 = vld [vmem:[%s1861_s7 + $0x8] sm:$0xff]  }
  0x3d   : > { %1345 = vmatprep.subr.bf16.mxu1 %v1561_v0 }
  0xf6   : > { %v451_v13 = vpop.f32.mrb[0].mxu1 }
  0xf7   : > { %v1307_v14 = vpop.f32.mrb[1].mxu1  ;;  %v595_v15 = vsel %vm410_vm1, %v451_v13, -inf }
  0xf8   : > { %596 = vmax.xlane.f32.xlu0 %v595_v15  ;;  %v454_v16 = vpop.f32.mrb[2].mxu1 }
  0xf9   : > { %v1308_v17 = vpop.f32.mrb[3].mxu1 }
  0xfe   : > { %v497_v18 = vpop.f32.mrb[4].mxu1 }
  0xff   : > { %v1313_v19 = vpop.f32.mrb[5].mxu1  ;;  %v598_v20 = vsel %vm410_vm1, %v497_v18, -inf }
 0x100   : > { %599 = vmax.xlane.f32.xlu0 %v598_v20  ;;  %v500_v21 = vpop.f32.mrb[6].mxu1 }
 0x101   : > { %v1314_v22 = vpop.f32.mrb[7].mxu1 }
 0x102   : > { %v1447_v22 = vld [vmem:[%s1859_s5] sm:$0xff]  }
 0x106   : > { %v543_v23 = vpop.f32.mrb[8].mxu1 }
 0x107   : > { %v1319_v24 = vpop.f32.mrb[9].mxu1  ;;  %v601_v25 = vsel %vm410_vm1, %v543_v23, -inf }
 0x108   : > { %602 = vmax.xlane.f32.xlu1 %v601_v25  ;;  %v546_v26 = vpop.f32.mrb[10].mxu1 }
 0x109   : > { %v1320_v27 = vpop.f32.mrb[11].mxu1 }
 0x10e   : > { %v589_v28 = vpop.f32.mrb[12].mxu1 }
 0x10f   : > { %v1325_v29 = vpop.f32.mrb[13].mxu1  ;;  %v604_v30 = vsel %vm410_vm1, %v589_v28, -inf }
 0x110   : > { %605 = vmax.xlane.f32.xlu1 %v604_v30  ;;  %v592_v31 = vpop.f32.mrb[14].mxu1 }
 0x111   : > { %v1326_v32 = vpop.f32.mrb[15].mxu1 }
 0x185   : > { %v597_v33 = vpop.xlane.xlu0 %596 }
 0x186   : > { %v607_v34 = vsub.f32 %v451_v13, %v597_v33 }
 0x188   : > { %v611_v35 = vmul.f32 1.442695, %v607_v34 }
 0x18a   : > { %1459 = vpow2.f32 %v611_v35 }
 0x18d   : > { %v600_v36 = vpop.xlane.xlu0 %599 }
 0x18e   : > { %v608_v37 = vsub.f32 %v497_v18, %v600_v36 }
 0x190   : > { %v613_v38 = vmul.f32 1.442695, %v608_v37  ;;  %v909_v37 = vld [vmem:[%s378_s14] sm:$0xff]  ;;  %s1234_s14 = sshll.u32 %s369_s12, 3 }
 0x191   : > { %s371_s20 = scalar_lea.vmem [#allocation3], %s1234_s14 }
 0x192   : > { %1461 = vpow2.f32 %v613_v38  ;;  %s1116_s19 = sshll.u32 %s371_s20, 4  ;;  %s1808_s19 = int_to_ptr.vmem [resolvable:$true] %s1116_s19 }
 0x194   : > { %v1460_v39 = vpop.eup %1459 }
 0x195   : > { %v603_v40 = vpop.xlane.xlu1 %602  ;;  %v619_v41 = vsel %vm410_vm1, %v1460_v39, 0.0 }
 0x196   : > { %v609_v42 = vsub.f32 %v543_v23, %v603_v40  ;;  %620 = vadd.xlane.f32.xlu0 %v619_v41  ;;  %v1448_v23 = vld [vmem:[%s1859_s5 + $0x8] sm:$0xff]  }
 0x198   : > { %v615_v43 = vmul.f32 1.442695, %v609_v42 }
 0x19a   : > { %1463 = vpow2.f32 %v615_v43 }
 0x19c   : > { %v1462_v44 = vpop.eup %1461 }
 0x19d   : > { %v606_v45 = vpop.xlane.xlu1 %605  ;;  %v622_v46 = vsel %vm410_vm1, %v1462_v44, 0.0 }
 0x19e   : > { %v610_v47 = vsub.f32 %v589_v28, %v606_v45  ;;  %623 = vadd.xlane.f32.xlu1 %v622_v46  ;;  %v1449_v45 = vld [vmem:[%s1860_s6] sm:$0xff]   ;;  %v1450_v46 = vld [vmem:[%s1860_s6 + $0x8] sm:$0xff]  }
 0x1a0   : > { %v617_v48 = vmul.f32 1.442695, %v610_v47 }
 0x1a2   : > { %1465 = vpow2.f32 %v617_v48 }
 0x1a4   : > { %v1464_v49 = vpop.eup %1463 }
 0x1a5   : > { %v625_v50 = vsel %vm410_vm1, %v1464_v49, 0.0 }
 0x1a6   : > { %626 = vadd.xlane.f32.xlu0 %v625_v50 }
 0x1ac   : > { %v1466_v51 = vpop.eup %1465 }
 0x1ad   : > { %v628_v52 = vsel %vm410_vm1, %v1466_v51, 0.0 }
 0x1ae   : > { %629 = vadd.xlane.f32.xlu1 %v628_v52 }
 0x223   : > { %v621_v61 = vpop.xlane.xlu0 %620 }
 0x224   : > { %1467 = vrcp.f32 %v621_v61  ;;  %v1457_v61 = vld [vmem:[%s1861_s7 + $0x30] sm:$0xff]  }
 0x22b   : > { %v624_v62 = vpop.xlane.xlu1 %623 }
 0x22c   : > { %1469 = vrcp.f32 %v624_v62  ;;  %v1458_v62 = vld [vmem:[%s1861_s7 + $0x38] sm:$0xff]  }
 0x22e   : > { %v1468_v63 = vpop.eup %1467 }
 0x22f   : > { %v635_v1 = vmul.f32 %v1468_v63, %v1460_v39 }
 0x231   : > { %v639_v2 = vpack.c.bf16 %v635_v1, %v635_v1 }
 0x233   : > { %1330 = vmatmul.mubr.msk.bf16.vlgmr.msra.gmra.mrb[0].mxu0 %vm410_vm1, %v639_v2  ;;  %v627_v3 = vpop.xlane.xlu0 %626 }
 0x234   : > { %1471 = vrcp.f32 %v627_v3  ;;  %1340 = vmatpush3.bf16.msra.mxu0 %v740_v58  ;;  %1341 = vmatprep.mubr.msk.bf16.mxu0 %vm1562_vm0, %v1561_v0  ;;  %v1454_v58 = vld [vmem:[%s1861_s7 + $0x18] sm:$0xff]  }
 0x235   : > { %1351 = vmatprep.subr.bf16.mxu0 %v1561_v0 }
 0x236   : > { %v1470_v4 = vpop.eup %1469 }
 0x237   : > { %v636_v5 = vmul.f32 %v1470_v4, %v1462_v44 }
 0x239   : > { %v640_v6 = vpack.c.bf16 %v636_v5, %v636_v5 }
 0x23b   : > { %1336 = vmatmul.mubr.msk.bf16.vlgmr.msra.gmra.mrb[16].mxu1 %vm410_vm1, %v640_v6  ;;  %v630_v7 = vpop.xlane.xlu1 %629 }
 0x23c   : > { %1473 = vrcp.f32 %v630_v7  ;;  %1346 = vmatpush3.bf16.msra.mxu1 %v786_v60  ;;  %1347 = vmatprep.mubr.msk.bf16.mxu1 %vm1562_vm0, %v1561_v0  ;;  %v1456_v60 = vld [vmem:[%s1861_s7 + $0x28] sm:$0xff]  }
 0x23d   : > { %1359 = vmatprep.subr.bf16.mxu1 %v1561_v0 }
 0x23e   : > { %v1472_v8 = vpop.eup %1471 }
 0x23f   : > { %v637_v9 = vmul.f32 %v1472_v8, %v1464_v49 }
 0x241   : > { %v641_v10 = vpack.c.bf16 %v637_v9, %v637_v9 }
 0x243   : > { %1342 = vmatmul.mubr.msk.bf16.vlgmr.msra.gmra.mrb[4].mxu0 %vm410_vm1, %v641_v10 }
 0x244   : > { %1355 = vmatprep.mubr.msk.bf16.mxu0 %vm1562_vm0, %v1561_v0  ;;  %1352 = vmatpush3.bf16.msra.mxu0 %v1447_v22 }
 0x245   : > { %1353 = vmatprep.subr.bf16.mxu0 %v1561_v0 }
 0x246   : > { %v1474_v11 = vpop.eup %1473 }
 0x247   : > { %v638_v12 = vmul.f32 %v1474_v11, %v1466_v51  ;;  %v1253_v51 = vld [vmem:[%s1858_s4] ss:$0 sm:$0xff] }
 0x248   : > { %1354 = vmatpush3.bf16.msra.mxu0 %v1448_v23 }
 0x249   : > { %v642_v13 = vpack.c.bf16 %v638_v12, %v638_v12  ;;  %1367 = vmatprep.subr.bf16.mxu0 %v1561_v0 }
 0x24b   : > { %1348 = vmatmul.mubr.msk.bf16.vlgmr.msra.gmra.mrb[20].mxu1 %vm410_vm1, %v642_v13 }
 0x24c   : > { %1363 = vmatprep.mubr.msk.bf16.mxu1 %vm1562_vm0, %v1561_v0  ;;  %1360 = vmatpush3.bf16.msra.mxu1 %v1449_v45 }
 0x24d   : > { %1361 = vmatprep.subr.bf16.mxu1 %v1561_v0 }
 0x250   : > { %1362 = vmatpush3.bf16.msra.mxu1 %v1450_v46 }
 0x306   : > { %v684_v14 = vpop.f32.mrb[0].mxu0 }
 0x307   : > { %828 = vst.msk [vmem:[#allocation2] sm:$0xff] %vm410_vm1, %v684_v14  ;;  %v1331_v15 = vpop.f32.mrb[1].mxu0 }
 0x308   : > { %v687_v16 = vpop.f32.mrb[2].mxu0 }
 0x309   : > { %v1332_v17 = vpop.f32.mrb[3].mxu0 }
 0x30e   : > { %v730_v18 = vpop.f32.mrb[16].mxu1 }
 0x30f   : > { %830 = vrot.lane.b32.xlu0 %v730_v18, %s1563_s16  ;;  %v1337_v19 = vpop.f32.mrb[17].mxu1  ;;  %s1266_s16 = sshll.u32 %s1551_s30, 7  ;;  %s1102_s30 = scalar_lea.sflag [#allocation4], %s369_s12 }
 0x310   : > { %v733_v20 = vpop.f32.mrb[18].mxu1  ;;  %s1806_s23 = scalar_lea.hbm %s1862_s8, %s1266_s16 }
 0x311   : > { %v1338_v21 = vpop.f32.mrb[19].mxu1 }
 0x316   : > { %v776_v24 = vpop.f32.mrb[4].mxu0 }
 0x317   : > { %v1343_v25 = vpop.f32.mrb[5].mxu0  ;;  %836 = vrot.lane.b32.xlu1 %v776_v24, %s1564_s24  ;;  %s1481_s24 = scalar_lea.vmem %s1808_s19, 128 }
 0x318   : > { %v779_v26 = vpop.f32.mrb[6].mxu0  ;;  %p1482_p12 = scmp.ne.s32.totalorder %s1808_s19, %s1481_s24 }
 0x319   : > { %v1344_v27 = vpop.f32.mrb[7].mxu0 }
 0x31a   : > { %p1483_p13 = pnand %p1482_p12, %p1652_p4 }
 0x31c   : > { %p1484_p0 = pneg %p1483_p13 }
 0x31e   : > { %v822_v28 = vpop.f32.mrb[20].mxu1 }
 0x31f   : > { %842 = vrot.lane.b32.xlu1 %v822_v28, %s1565_s25  ;;  %v1349_v29 = vpop.f32.mrb[21].mxu1  ;;  %s1566_s25 = smov [#allocation3]  }
 0x320   : > { %v825_v30 = vpop.f32.mrb[22].mxu1  ;;  %s1485_s26 = sshll.u32 %s1566_s25, 4  ;;  %s1486_s26 = int_to_ptr.vmem [resolvable:$false] %s1485_s26 }
 0x321   : > { %v1350_v31 = vpop.f32.mrb[23].mxu1  ;;  %s1487_s11 = scalar_lea.vmem %s1486_s26, 256  ;;  %p1488_p1 = scmp.lt.s32.totalorder %s1808_s19, %s1486_s26 }
 0x322   : > { %p1489_p2 = scmp.lt.s32.totalorder %s1487_s11, %s1481_s24 }
 0x324   : > { %p1490_p3 = por %p1489_p2, %p1488_p1 }
 0x326   : > { %p1491_p5 = pnand %p1490_p3, %p1484_p0 }
 0x381   : > { %v831_v32 = vpop.permute.xlu0 %830 }
 0x382   : > { %834 = vst.msk [vmem:[#allocation2] sm:$0xff] %vm833_vm3, %v831_v32 }
 0x389   : > { %v837_v33 = vpop.permute.xlu1 %836 }
 0x38a   : > { %840 = vst.msk [vmem:[#allocation2] sm:$0xff] %vm839_vm4, %v837_v33 }
 0x391   : > { %v843_v34 = vpop.permute.xlu1 %842 }
 0x392   : > { %846 = vst.msk [vmem:[#allocation2] sm:$0xff] %vm845_vm5, %v843_v34 }
 0x399   : > { %v847_v35 = vld [vmem:[#allocation2] sm:$0xff] }
 0x39a   : > { %v848_v36 = vpack.c.bf16 %v847_v35, %v847_v35 }
 0x39c   : > { %1356 = vmatmul.mubr.msk.bf16.vlgmr.msra.gmra.mrb[8].mxu0 %vm865_vm6, %v848_v36 }
 0x39d   : > { %1383 = vmatprep.mubr.msk.bf16.mxu0 %vm1562_vm0, %v1561_v0  ;;  %1368 = vmatpush3.bf16.msra.mxu0 %v1451_v55 }
 0x39e   : > { %1369 = vmatprep.subr.bf16.mxu0 %v1561_v0 }
 0x3a1   : > { %1370 = vmatpush3.bf16.msra.mxu0 %v1452_v56 }
 0x3a2   : > { %1371 = vmatprep.subr.bf16.mxu0 %v1561_v0 }
 0x3a5   : > { %1372 = vmatpush3.bf16.msra.mxu0 %v1453_v57 }
 0x3a6   : > { %1373 = vmatprep.subr.bf16.mxu0 %v1561_v0 }
 0x3a9   : > { %1374 = vmatpush3.bf16.msra.mxu0 %v1454_v58 }
 0x3aa   : > { %1375 = vmatprep.subr.bf16.mxu0 %v1561_v0 }
 0x3ad   : > { %1376 = vmatpush3.bf16.msra.mxu0 %v1455_v59 }
 0x3ae   : > { %1377 = vmatprep.subr.bf16.mxu0 %v1561_v0 }
 0x3b1   : > { %1378 = vmatpush3.bf16.msra.mxu0 %v1456_v60 }
 0x3b2   : > { %1379 = vmatprep.subr.bf16.mxu0 %v1561_v0 }
 0x3b5   : > { %1380 = vmatpush3.bf16.msra.mxu0 %v1457_v61 }
 0x3b6   : > { %1381 = vmatprep.subr.bf16.mxu0 %v1561_v0 }
 0x3b9   : > { %1382 = vmatpush3.bf16.msra.mxu0 %v1458_v62 }
 0x46f   : > { %v903_v38 = vpop.f32.mrb[8].mxu0 }
 0x470   : > { %v1752_v39 = vadd.f32 %v909_v37, %v903_v38  ;;  %v1357_v40 = vpop.f32.mrb[9].mxu0 }
 0x471   : > { %v906_v41 = vpop.f32.mrb[10].mxu0 }
 0x472   : > { %v1358_v42 = vpop.f32.mrb[11].mxu0  ;;  %v911_v43 = vmul.f32 %v1752_v39, %v1752_v39 }
 0x474   : > { %v912_v44 = vsel %vm865_vm6, %v911_v43, 0.0 }
 0x475   : > { %913 = vadd.xlane.f32.xlu1 %v912_v44 }
 0x502   : > { %v914_v47 = vpop.xlane.xlu1 %913 }
 0x503   : > { %v916_v48 = vmul.f32 0.03125, %v914_v47 }
 0x505   : > { %v917_v49 = vadd.f32 1e-06, %v916_v48 }
 0x507   : > { %1475 = vrsqrt.f32 %v917_v49 }
 0x511   : > { %v1476_v50 = vpop.eup %1475 }
 0x512   : > { %v919_v52 = vmul.f32 %v1476_v50, %v1752_v39 }
 0x514   : > { %v927_v53 = vmul.f32 %v1253_v51, %v919_v52 }
 0x516   : > { %v928_v54 = vpack.c.bf16 %v927_v53, %v927_v53 }
 0x518   : > { %1364 = vmatmul.mubr.msk.bf16.vlgmr.msra.gmra.mrb[24].mxu1 %vm865_vm6, %v928_v54 }
 0x5eb   : > { %v982_v63 = vpop.f32.mrb[24].mxu1 }
 0x5ec   : > { %v988_v1 = vsub.f32 0.0, %v982_v63  ;;  %v1365_v2 = vpop.f32.mrb[25].mxu1 }
 0x5ed   : > { %v985_v3 = vpop.f32.mrb[26].mxu1 }
 0x5ee   : > { %v989_v4 = vmul.f32 1.442695, %v988_v1  ;;  %v1366_v5 = vpop.f32.mrb[27].mxu1 }
 0x5f0   : > { %1477 = vpow2.f32 %v989_v4 }
 0x5fa   : > { %v1478_v6 = vpop.eup %1477 }
 0x5fb   : > { %v991_v7 = vadd.f32 1.0, %v1478_v6 }
 0x5fd   : > { %1479 = vrcp.f32 %v991_v7 }
 0x607   : > { %v1480_v8 = vpop.eup %1479 }
 0x608   : > { %v993_v9 = vmul.f32 %v1480_v8, %v982_v63 }
 0x60a   : > { %v994_v0 = vpack.c.bf16 %v993_v9, %v993_v9 }
 0x60c   : > { %1384 = vmatmul.mubr.bf16.vlgmr.msra.gmra.mrb[12].mxu0 %v994_v0 }
 0x6df   : > { %v1093_v10 = vpop.f32.mrb[12].mxu0 }
 0x6e0   : > { %v1099_v11 = vadd.f32 %v1093_v10, %v1752_v39  ;;  %v1385_v12 = vpop.f32.mrb[13].mxu0 }
 0x6e1   : > { %v1096_v13 = vpop.f32.mrb[14].mxu0 }
 0x6e2   : > { %v1386_v14 = vpop.f32.mrb[15].mxu0  ;;  %1100 = vst.msk [vmem:[%s371_s20] sm:$0xff] %vm865_vm6, %v1099_v11 }
 0x6e3   : > { %1494 = shalt.err (!%p1491_p5)
}
 0x6e4   : > { %s1495_s12 = scalar_lea.hbm %s1806_s23, 128  ;;  %s1499_s20 = scalar_lea.hbm %s1862_s8, 256 }
 0x6e5   : > { %p1496_p6 = scmp.ne.s32.totalorder %s1806_s23, %s1495_s12  ;;  %p1500_p10 = scmp.lt.u32.totalorder %s1806_s23, %s1862_s8 }
 0x6e6   : > { %p1501_p11 = scmp.lt.u32.totalorder %s1499_s20, %s1495_s12  ;;  %p1503_p13 = scmp.lt.u32.totalorder %s1495_s12, %s1806_s23 }
 0x6e7   : > { %p1497_p7 = pnand %p1496_p6, %p1652_p4 }
 0x6e8   : > { %p1502_p12 = por %p1501_p11, %p1500_p10 }
 0x6e9   : > { %p1498_p9 = pneg %p1497_p7 }
 0x6ea   : > { %p1504_p0 = por %p1503_p13, %p1502_p12 }
 0x6ec   : > { %p1505_p1 = pnand %p1504_p0, %p1498_p9 }
 0x6ee   : > { %1508 = shalt.err (!%p1505_p1)
}
 0x6ef   : > { %1387 = dma.vmem_to_hbm [thread:$0]  (%p1652_p4), %s1808_s19, 128, %s1806_s23, %s1102_s30  }
 0x6f0 PF: > { %p1393_p2 = scmp.ge.s32.totalorder %s1559_s10, 2  ;;  %s1128_s24 = sand.u32 1, %s1539_s27  }
 0x6f1   : > { %s1129_s25 = scalar_lea.sflag [#allocation4], %s1128_s24 }
 0x6f2   : > { %p1390_p3 = pnand %p1393_p2, %p1659_p8 }
 0x6f4   : > { %1534 = dma.done.wait (!%p1390_p3), %s1129_s25, 128  }
 0x6f5   : > { %1536 = vsyncadd (!%p1390_p3), %s1129_s25, 4294967168  ;;  %s21_s10 = sadd.s32 1, %s1559_s10   ;;  %s1865_s27 = smov %s1543_s28 }
 0x6f6   : > { %p18_p5 = scmp.ge.s32.totalorder %s21_s10, 4   ;;  %s1866_s28 = smov %s1547_s29 }
 0x6f7   : > { %s1867_s29 = smov %s1665_s18  ;;  %s1868_s30 = smov %s1555_s9 }
 0x6f8   : > { %s1869_s9 = smov %s1871_s13  ;;  %20 = sbr.rel (!%p18_p5) target bundleno = 4 (0x4), region = 96 }
 0x6ff   :  { %1134 = vsyncpa [#allocation4], 1 }
 0x700   :  { %1136 = vsyncpa [#allocation4 + $0x1], 1 }

</bundles_post_ra>
